<compile_context>
chip_gen: v6e
topology: v6e:2x2x1
jax: 0.10.0
libtpu: 0.0.40
codegen_flags: <defaults>
</compile_context>

<pallas_src>
import jax
import jax.numpy as jnp
from jax.experimental import pallas as pl
from jax.experimental.pallas import tpu as pltpu


# --------------------------------------------------------------------------
# Kernel body: elementwise ReLU on the current (brows, cols) VMEM tile.
# --------------------------------------------------------------------------
def _relu_kernel(x_ref, o_ref):
    o_ref[...] = jnp.maximum(x_ref[...], jnp.zeros((), dtype=x_ref.dtype))


_LANE = 128
_TARGET_TILE_BYTES = 8 * 1024 * 1024   # per-tile target (cuts per-step overhead on v7x)
_MIN_PALLAS_BYTES = 1 * 1024 * 1024    # below this, pallas_call dispatch dominates
_MAX_COLS = 8192                       # keep 8-sublane row granularity fine-grained


def _cdiv(a: int, b: int) -> int:
    return -(-a // b)


def _round_up(a: int, m: int) -> int:
    return _cdiv(a, m) * m


def _pick_layout(total: int, itemsize: int):
    """Choose a lane-dense 2-D slab (rows, cols) and a row-block size.

    Preconditions (enforced by the wrapper): total % 128 == 0 and
    total * itemsize >= _MIN_PALLAS_BYTES, so a zero-copy reshape to
    (rows, cols) with cols a multiple of 128 always exists and rows is large
    enough to split into >= 2 row-blocks.
    """
    # Widest lane count (any multiple of 128, not just powers of two) that
    # divides `total` exactly; capped so rows = total/cols >= 16.
    max_cols = min(_MAX_COLS, (total // 16) // _LANE * _LANE)
    cols = _LANE
    for c in range(max_cols, _LANE - 1, -_LANE):
        if total % c == 0:
            cols = c
            break
    rows = total // cols

    # Sublane granularity legal for the dtype's native packing
    # (f32 -> 8, bf16 -> 16, int8/fp8 -> 32).
    sub = max(8, 32 // itemsize)

    # Rows per block: aim for ~_TARGET_TILE_BYTES tiles, but always use >= 2
    # blocks (an even count) so v7x's 2nd TensorCore gets work, and keep the
    # blocks near-equal so there is no tiny tail step.
    target_brows = max(sub, (_TARGET_TILE_BYTES // (cols * itemsize)) // sub * sub)
    n_blocks = max(2, _cdiv(rows, target_brows))
    if n_blocks % 2:
        n_blocks += 1
    brows = _round_up(_cdiv(rows, n_blocks), sub)
    if brows >= rows:  # defensive: a full-extent block is always legal
        brows = rows
    return rows, cols, brows


def crelu(x, complex_axis: int = 1):
    """CReLU forward (chunk -> ReLU,ReLU -> concat) == elementwise ReLU."""
    assert x.shape[complex_axis] % 2 == 0, "complex axis must be even (real/imag halves)"

    total = x.size
    itemsize = jnp.dtype(x.dtype).itemsize

    # (1) Tiny tensors: custom-call dispatch + grid setup dominates; a fused
    #     XLA elementwise op is already at the HBM roofline.
    # (2) Element count not a multiple of 128: a dense 2-D reshape would need
    #     pad+slice (2 extra full HBM passes) or prefix-kernel+tail+concat
    #     (1 extra pass); plain jnp.maximum is exactly 1 read + 1 write, i.e.
    #     minimal, so prefer it for this rare case.
    if total * itemsize < _MIN_PALLAS_BYTES or total % _LANE != 0:
        return jnp.maximum(x, jnp.zeros((), dtype=x.dtype))

    rows, cols, brows = _pick_layout(total, itemsize)
    slab = x.reshape(rows, cols)  # zero pad/slice round-trips on this path

    tile_bytes = brows * cols * itemsize
    # in + out, double-buffered = 4x tile, plus headroom for compiler scratch.
    vmem_limit = 4 * tile_bytes + 8 * 1024 * 1024

    grid = (_cdiv(rows, brows),)
    out = pl.pallas_call(
        _relu_kernel,
        out_shape=jax.ShapeDtypeStruct((rows, cols), x.dtype),
        grid=grid,
        in_specs=[pl.BlockSpec((brows, cols), lambda i: (i, 0))],
        out_specs=pl.BlockSpec((brows, cols), lambda i: (i, 0)),
        # Reuse the slab buffer as the output: every output element is
        # overwritten, so aliasing is safe; saves one tensor-sized HBM
        # allocation.  (Under jit, donate `x` to avoid a defensive copy.)
        input_output_aliases={0: 0},
        compiler_params=pltpu.CompilerParams(
            dimension_semantics=("parallel",),  # shard grid across v7x's 2 TCs
            vmem_limit_bytes=vmem_limit,        # explicit: v5e default is only 16 MiB
        ),
    )(slab)
    return out.reshape(x.shape)


# --------------------------------------------------------------------------
# Pure-JAX reference (mirrors the PyTorch module exactly).
# --------------------------------------------------------------------------
def _ref_crelu(x, complex_axis=1):
    half = x.shape[complex_axis] // 2
    real = jax.lax.slice_in_dim(x, 0, half, axis=complex_axis)
    imag = jax.lax.slice_in_dim(x, half, 2 * half, axis=complex_axis)
    return jnp.concatenate(
        [jnp.maximum(real, 0), jnp.maximum(imag, 0)], axis=complex_axis
    )


if __name__ == "__main__":
    key = jax.random.PRNGKey(0)
    k1, k2, k3, k4 = jax.random.split(key, 4)

    # 1) Module-default small case (NCHW, complex_axis=1, 8 KiB): exercises
    #    the tiny-tensor fast path.
    x_small = jax.random.normal(k1, (2, 4, 16, 16), dtype=jnp.float32)
    out_small = jax.block_until_ready(crelu(x_small))
    assert out_small.shape == x_small.shape and out_small.dtype == x_small.dtype
    assert jnp.array_equal(out_small, _ref_crelu(x_small)), "mismatch (small case)"

    # 2) Large aligned f32 case -> Pallas path, 2 row-blocks with a partial
    #    last block (72 rows split 40+32): regression test for the masked tail.
    x_big = jax.random.normal(k2, (4, 16, 96, 96), dtype=jnp.float32)
    out_big = jax.block_until_ready(crelu(x_big))
    assert jnp.array_equal(out_big, _ref_crelu(x_big)), "mismatch (tiled f32 case)"

    # 3) bf16 case -> Pallas path, balanced even grid (2 x 256 rows).
    x_bf16 = jax.random.normal(k3, (2, 8, 512, 512), dtype=jnp.bfloat16)
    out_bf16 = jax.block_until_ready(crelu(x_bf16))
    assert jnp.array_equal(out_bf16, _ref_crelu(x_bf16)), "mismatch (bf16 case)"

    # 4) Large but 128-unaligned element count -> minimal-traffic fallback.
    x_odd = jax.random.normal(k4, (2, 6, 250, 250), dtype=jnp.float32)
    out_odd = jax.block_until_ready(crelu(x_odd))
    assert jnp.array_equal(out_odd, _ref_crelu(x_odd)), "mismatch (unaligned case)"

    print("KERNEL_OK")
</pallas_src>

<mosaic_0001>
module attributes {stable_mosaic.version = 11 : i64} {
  func.func @_relu_kernel(%arg0: i32, %arg1: memref<40x8192xf32, #tpu.memory_space<vmem>>, %arg2: memref<40x8192xf32, #tpu.memory_space<vmem>>) attributes {dimension_semantics = [#tpu.dimension_semantics<parallel>], iteration_bounds = array<i64: 2>, scalar_prefetch = 0 : i64, scratch_operands = 0 : i64, tpu.core_type = #tpu.core_type<tc>, window_params = [{transform_indices = @transform_0, window_bounds = array<i64: 40, 8192>}, {transform_indices = @transform_1, window_bounds = array<i64: 40, 8192>}]} {
    %c0 = arith.constant 0 : index
    %c0_0 = arith.constant 0 : index
    %0 = vector.load %arg1[%c0, %c0_0] : memref<40x8192xf32, #tpu.memory_space<vmem>>, vector<40x8192xf32>
    %cst = arith.constant 0.000000e+00 : f32
    %1 = vector.broadcast %cst : f32 to vector<40x8192xf32>
    %2 = arith.maximumf %0, %1 : vector<40x8192xf32>
    %c0_1 = arith.constant 0 : index
    %c0_2 = arith.constant 0 : index
    %3 = vector.load %arg2[%c0_1, %c0_2] : memref<40x8192xf32, #tpu.memory_space<vmem>>, vector<40x8192xf32>
    tpu.vector_store %arg2[%c0_1, %c0_2], %2 {strides = array<i32>} : memref<40x8192xf32, #tpu.memory_space<vmem>>, vector<40x8192xf32>,
    return
  }
  func.func @transform_0(%arg0: i32) -> (i32, i32) {
    %c0_i32 = arith.constant 0 : i32
    %c0_i32_0 = arith.constant 0 : i32
    return %arg0, %c0_i32 : i32, i32
  }
  func.func @transform_1(%arg0: i32) -> (i32, i32) {
    %c0_i32 = arith.constant 0 : i32
    %c0_i32_0 = arith.constant 0 : i32
    return %arg0, %c0_i32 : i32, i32
  }
}

</mosaic_0001>

<bundles_post_ra>
// kernel: tpu_custom_call.1
= control target key start
LH: loop header
LB: loop body
LE: loop exit
PB: predicated region body
PF: predicated region fallthrough
CT: control target
= control target key end

     0   :  { %6 = vsyncpa [#allocation3], 0  ;;  %s2204_s0 = inlined_call_operand.hbm [shape: f32[72,8192], index: 0, kind: input, shape index: {}, may-alias: {0,1}]   ;;  %s2205_s1 = inlined_call_operand.hbm [shape: f32[72,8192], index: 1, kind: output, shape index: {}, may-alias: {0,1}]  }
   0x1   :  { %8 = vsyncpa [#allocation3 + $0x1], 0 }
   0x2   :  { %9 = vsyncpa [#allocation4], 0 }
   0x3   :  { %11 = vsyncpa [#allocation4 + $0x1], 0  ;;  %s1391_s6 = smov 0   ;;  %s1393_s7 = smov 0  }
   0x4   :  { %s1395_s8 = smov 0   ;;  %s1397_s9 = smov 0  }
   0x5 LB: > { %s1412_s10 = sadd.s32 4294967295, %s1373_s9   ;;  %s1210_s11 = sadd.s32 4294967294, %s1373_s9   ;;  %s1373_s9 = sphi %s1397_s9, %s2215_s9   ;;  %s1369_s8 = sphi %s1395_s8, %s2214_s8   ;;  %s1365_s7 = sphi %s1393_s7, %s2213_s7   ;;  %s1361_s6 = sphi %s1391_s6, %s2212_s6  }
   0x6   : > { %s1416_s12 = sadd.s32 1, %s1373_s9   ;;  %s24_s13 = sadd.s32 1, %s1369_s8 }
   0x7   : > { %s21_s14 = ssub.s32 %s1373_s9, %s1416_s12  ;;  %p31_p0 = scmp.ne.s32.totalorder %s1369_s8, %s1365_s7 }
   0x8   : > { %p22_p1 = scmp.eq.s32.totalorder %s21_s14, 0  ;;  %p32_p2 = scmp.eq.s32.totalorder %s1373_s9, 0 }
   0x9   : > { %p37_p3 = scmp.ne.s32.totalorder %s1365_s7, %s1361_s6  ;;  %p38_p4 = scmp.eq.s32.totalorder %s1412_s10, 0 }
   0xa   : > { %s1428_s15 = scalar_select %p22_p1, %s1369_s8, %s24_s13  }
   0xb   : > { %p33_p5 = por %p32_p2, %p31_p0  ;;  %p1430_p6 = por %p38_p4, %p37_p3 }
   0xc   : > { %p61_p7 = scmp.eq.s32.totalorder %s1412_s10, 1  ;;  %p67_p8 = scmp.eq.s32.totalorder %s1210_s11, 1 }
   0xd   : > { %p2206_p11 = scmp.ge.s32.totalorder %s1373_s9, 2 }
   0xe   : > { %p1435_p9 = por %p61_p7, %p31_p0  ;;  %p1439_p10 = por %p67_p8, %p37_p3 }
   0xf   : > { %83 = sbr.rel (%p2206_p11) target bundleno = 54 (0x36), region = 16 }
  0x10   : > { %s2209_s18 = scalar_select %p1439_p10, 1, 0 }
  0x14   : > { %86 = sbr.rel (!%p33_p5) target bundleno = 54 (0x36), region = 20  ;;  %s87_s19 = sand.u32 (%p33_p5), 1, %s1369_s8  }
  0x15   : > { %s92_s20 = smul.u32 (%p33_p5), 5, %s1373_s9  ;;  %s1451_s25 = scalar_lea.sflag (%p33_p5), [#allocation3], %s87_s19 }
  0x16   : > { %s1238_s21 = smul.u32 (%p33_p5), 2560, %s87_s19 }
  0x17   : > { %s93_s22 = ssub.s32 (%p33_p5), 9, %s92_s20 }
  0x18   : > { %p94_p12 = scmp.lt.s32.totalorder (%p33_p5), %s93_s22, 5  ;;  %s91_s26 = scalar_lea.vmem (%p33_p5), [#allocation2], %s1238_s21 }
  0x1a   : > { %s2217_s22 = smov (!%p94_p12, %s93_s22), 5 }
  0x1b   : > { %s1448_s23 = sshll.u32 %s2217_s22, 13 }
  0x1c   : > { %s99_s24 = ssub.s32 40960, %s1448_s23 }
  0x1d   : > { %100 = vsyncadd %s1451_s25, %s99_s24  ;;  %p1215_p13 = scmp.ne.s32.totalorder %s1448_s23, 0  ;;  %s1236_s27 = smul.u32 40960, %s1373_s9 }
  0x1e   : > { %s106_s28 = sshll.u32 %s91_s26, 4  ;;  %s1287_s11 = scalar_lea.hbm %s2204_s0, 73728  ;;  %s1461_s28 = int_to_ptr.vmem [resolvable:$true] %s106_s28 }
  0x1f   : > { %s1459_s2 = scalar_lea.hbm %s2204_s0, %s1236_s27 }
  0x20   : > { %s1283_s3 = scalar_lea.hbm %s1459_s2, %s1448_s23  ;;  %p1288_p3 = scmp.lt.s32.totalorder %s1459_s2, %s2204_s0 }
  0x21   : > { %p1284_p0 = scmp.ne.s32.totalorder %s1459_s2, %s1283_s3  ;;  %p1289_p4 = scmp.lt.s32.totalorder %s1287_s11, %s1283_s3 }
  0x23   : > { %p1285_p1 = pnand %p1284_p0, %p1215_p13  ;;  %p1290_p5 = por %p1289_p4, %p1288_p3 }
  0x25   : > { %p1286_p2 = pneg %p1285_p1 }
  0x27   : > { %p1291_p7 = pnand %p1290_p5, %p1286_p2 }
  0x29   : > { %1294 = shalt.err (!%p1291_p7)
}
  0x2a   : > { %s1295_s19 = scalar_lea.vmem %s1461_s28, %s1448_s23  ;;  %s1375_s20 = smov [#allocation2]  }
  0x2b   : > { %p1296_p8 = scmp.ne.s32.totalorder %s1461_s28, %s1295_s19  ;;  %s1299_s21 = sshll.u32 %s1375_s20, 4  ;;  %s1300_s21 = int_to_ptr.vmem [resolvable:$false] %s1299_s21 }
  0x2c   : > { %s1301_s22 = scalar_lea.vmem %s1300_s21, 81920  ;;  %p1302_p1 = scmp.lt.s32.totalorder %s1461_s28, %s1300_s21 }
  0x2d   : > { %p1297_p12 = pnand %p1296_p8, %p1215_p13  ;;  %p1303_p11 = scmp.lt.s32.totalorder %s1301_s22, %s1295_s19 }
  0x2f   : > { %p1298_p0 = pneg %p1297_p12  ;;  %p1304_p10 = por %p1303_p11, %p1302_p1 }
  0x31   : > { %p1305_p3 = pnand %p1304_p10, %p1298_p0 }
  0x33   : > { %1308 = shalt.err (!%p1305_p3)
}
  0x34   : > { %s1376_s24 = smov 8192   ;;  %s1377_s26 = smov 512  }
  0x35   : > { %112 = dma.hbm_to_vmem [thread:$0]  (%p1215_p13), %s1459_s2, %s1448_s23, %s1461_s28, %s1451_s25, %s1376_s24, %s1376_s24, %s1377_s26  }
  0x36 PF: > { %p1220_p2 = scmp.ge.s32.totalorder %s1373_s9, 1  ;;  %p114_p4 = scmp.lt.s32.totalorder %s1373_s9, 3 }
  0x38   : > { %p115_p5 = pnand %p1220_p2, %p114_p4 }
  0x39   : > { %s1490_s27 = sand.u32 (!%p115_p5), 1, %s1365_s7  }
  0x3a   : > { %118 = sbr.rel (%p115_p5) target bundleno = 255 (0xff), region = 24  ;;  %s121_s30 = scalar_lea.sflag (!%p115_p5), [#allocation3], %s1490_s27 }
  0x3b   : > { %s1239_s29 = smul.u32 (!%p115_p5), 2560, %s1490_s27 }
  0x3d   : > { %s1494_s3 = scalar_lea.vmem (!%p115_p5), [#allocation2], %s1239_s29 }
  0x3f   : > { %1352 = dma.done.wait (%p1430_p6), %s121_s30, 40960  }
  0x40   : > { %1354 = vsyncadd (%p1430_p6), %s121_s30, 4294926336  ;;  %v155_v0 = vld [vmem:[%s1494_s3] sm:$0xff]  ;;  %v156_v1 = vld [vmem:[%s1494_s3 + $0x8] sm:$0xff]  ;;  %s1509_s16 = scalar_lea.vmem [#allocation5], %s1239_s29  ;;  %s1116_s23 = scalar_lea.sflag [#allocation4], %s1490_s27 }
  0x41   : > { %v157_v2 = vld [vmem:[%s1494_s3 + $0x10] sm:$0xff]  ;;  %v475_v3 = vmax.f32 %v155_v0, 0.0  ;;  %v476_v4 = vmax.f32 %v156_v1, 0.0  ;;  %v158_v6 = vld [vmem:[%s1494_s3 + $0x18] sm:$0xff]  ;;  %v159_v7 = vld [vmem:[%s1494_s3 + $0x20] sm:$0xff]  ;;  %s1123_s25 = smul.u32 (%p1435_p9), 5, %s1412_s10 }
  0x42   : > { %v477_v5 = vmax.f32 %v157_v2, 0.0  ;;  %v160_v8 = vld [vmem:[%s1494_s3 + $0x28] sm:$0xff]  ;;  %v478_v9 = vmax.f32 %v158_v6, 0.0  ;;  %v479_v10 = vmax.f32 %v159_v7, 0.0  ;;  %v161_v12 = vld [vmem:[%s1494_s3 + $0x30] sm:$0xff]  ;;  %v162_v13 = vld [vmem:[%s1494_s3 + $0x38] sm:$0xff] }
  0x43   : > { %v480_v11 = vmax.f32 %v160_v8, 0.0  ;;  %v163_v14 = vld [vmem:[%s1494_s3 + $0x40] sm:$0xff]  ;;  %795 = vst [vmem:[%s1509_s16] sm:$0xff] %v475_v3  ;;  %796 = vst [vmem:[%s1509_s16 + $0x8] sm:$0xff] %v476_v4  ;;  %v481_v15 = vmax.f32 %v161_v12, 0.0  ;;  %v482_v16 = vmax.f32 %v162_v13, 0.0  ;;  %v164_v18 = vld [vmem:[%s1494_s3 + $0x48] sm:$0xff] }
  0x44   : > { %797 = vst [vmem:[%s1509_s16 + $0x10] sm:$0xff] %v477_v5  ;;  %v483_v17 = vmax.f32 %v163_v14, 0.0  ;;  %v165_v19 = vld [vmem:[%s1494_s3 + $0x50] sm:$0xff]  ;;  %v166_v20 = vld [vmem:[%s1494_s3 + $0x58] sm:$0xff]  ;;  %798 = vst [vmem:[%s1509_s16 + $0x18] sm:$0xff] %v478_v9  ;;  %v484_v21 = vmax.f32 %v164_v18, 0.0 }
  0x45   : > { %799 = vst [vmem:[%s1509_s16 + $0x20] sm:$0xff] %v479_v10  ;;  %800 = vst [vmem:[%s1509_s16 + $0x28] sm:$0xff] %v480_v11  ;;  %v485_v22 = vmax.f32 %v165_v19, 0.0  ;;  %v486_v23 = vmax.f32 %v166_v20, 0.0  ;;  %v167_v24 = vld [vmem:[%s1494_s3 + $0x60] sm:$0xff]  ;;  %v168_v25 = vld [vmem:[%s1494_s3 + $0x68] sm:$0xff] }
  0x46   : > { %v169_v26 = vld [vmem:[%s1494_s3 + $0x70] sm:$0xff]  ;;  %801 = vst [vmem:[%s1509_s16 + $0x30] sm:$0xff] %v481_v15  ;;  %802 = vst [vmem:[%s1509_s16 + $0x38] sm:$0xff] %v482_v16  ;;  %v487_v27 = vmax.f32 %v167_v24, 0.0  ;;  %v488_v28 = vmax.f32 %v168_v25, 0.0  ;;  %v170_v30 = vld [vmem:[%s1494_s3 + $0x78] sm:$0xff] }
  0x47   : > { %803 = vst [vmem:[%s1509_s16 + $0x40] sm:$0xff] %v483_v17  ;;  %v489_v29 = vmax.f32 %v169_v26, 0.0  ;;  %v171_v31 = vld [vmem:[%s1494_s3 + $0x80] sm:$0xff]  ;;  %v172_v32 = vld [vmem:[%s1494_s3 + $0x88] sm:$0xff]  ;;  %804 = vst [vmem:[%s1509_s16 + $0x48] sm:$0xff] %v484_v21  ;;  %v490_v33 = vmax.f32 %v170_v30, 0.0 }
  0x48   : > { %805 = vst [vmem:[%s1509_s16 + $0x50] sm:$0xff] %v485_v22  ;;  %806 = vst [vmem:[%s1509_s16 + $0x58] sm:$0xff] %v486_v23  ;;  %v491_v34 = vmax.f32 %v171_v31, 0.0  ;;  %v492_v35 = vmax.f32 %v172_v32, 0.0  ;;  %v173_v36 = vld [vmem:[%s1494_s3 + $0x90] sm:$0xff]  ;;  %v174_v37 = vld [vmem:[%s1494_s3 + $0x98] sm:$0xff] }
  0x49   : > { %v175_v38 = vld [vmem:[%s1494_s3 + $0xa0] sm:$0xff]  ;;  %807 = vst [vmem:[%s1509_s16 + $0x60] sm:$0xff] %v487_v27  ;;  %808 = vst [vmem:[%s1509_s16 + $0x68] sm:$0xff] %v488_v28  ;;  %v493_v39 = vmax.f32 %v173_v36, 0.0  ;;  %v494_v40 = vmax.f32 %v174_v37, 0.0  ;;  %v176_v42 = vld [vmem:[%s1494_s3 + $0xa8] sm:$0xff] }
  0x4a   : > { %809 = vst [vmem:[%s1509_s16 + $0x70] sm:$0xff] %v489_v29  ;;  %v495_v41 = vmax.f32 %v175_v38, 0.0  ;;  %v177_v43 = vld [vmem:[%s1494_s3 + $0xb0] sm:$0xff]  ;;  %v178_v44 = vld [vmem:[%s1494_s3 + $0xb8] sm:$0xff]  ;;  %810 = vst [vmem:[%s1509_s16 + $0x78] sm:$0xff] %v490_v33  ;;  %v496_v45 = vmax.f32 %v176_v42, 0.0 }
  0x4b   : > { %811 = vst [vmem:[%s1509_s16 + $0x80] sm:$0xff] %v491_v34  ;;  %812 = vst [vmem:[%s1509_s16 + $0x88] sm:$0xff] %v492_v35  ;;  %v497_v46 = vmax.f32 %v177_v43, 0.0  ;;  %v498_v47 = vmax.f32 %v178_v44, 0.0  ;;  %v179_v48 = vld [vmem:[%s1494_s3 + $0xc0] sm:$0xff]  ;;  %v180_v49 = vld [vmem:[%s1494_s3 + $0xc8] sm:$0xff] }
  0x4c   : > { %v181_v50 = vld [vmem:[%s1494_s3 + $0xd0] sm:$0xff]  ;;  %813 = vst [vmem:[%s1509_s16 + $0x90] sm:$0xff] %v493_v39  ;;  %814 = vst [vmem:[%s1509_s16 + $0x98] sm:$0xff] %v494_v40  ;;  %v499_v51 = vmax.f32 %v179_v48, 0.0  ;;  %v500_v52 = vmax.f32 %v180_v49, 0.0  ;;  %v182_v54 = vld [vmem:[%s1494_s3 + $0xd8] sm:$0xff] }
  0x4d   : > { %815 = vst [vmem:[%s1509_s16 + $0xa0] sm:$0xff] %v495_v41  ;;  %v501_v53 = vmax.f32 %v181_v50, 0.0  ;;  %v183_v55 = vld [vmem:[%s1494_s3 + $0xe0] sm:$0xff]  ;;  %v184_v56 = vld [vmem:[%s1494_s3 + $0xe8] sm:$0xff]  ;;  %816 = vst [vmem:[%s1509_s16 + $0xa8] sm:$0xff] %v496_v45  ;;  %v502_v57 = vmax.f32 %v182_v54, 0.0 }
  0x4e   : > { %817 = vst [vmem:[%s1509_s16 + $0xb0] sm:$0xff] %v497_v46  ;;  %818 = vst [vmem:[%s1509_s16 + $0xb8] sm:$0xff] %v498_v47  ;;  %v503_v58 = vmax.f32 %v183_v55, 0.0  ;;  %v504_v59 = vmax.f32 %v184_v56, 0.0  ;;  %v185_v60 = vld [vmem:[%s1494_s3 + $0xf0] sm:$0xff]  ;;  %v186_v61 = vld [vmem:[%s1494_s3 + $0xf8] sm:$0xff] }
  0x4f   : > { %v187_v62 = vld [vmem:[%s1494_s3 + $0x100] sm:$0xff]  ;;  %819 = vst [vmem:[%s1509_s16 + $0xc0] sm:$0xff] %v499_v51  ;;  %820 = vst [vmem:[%s1509_s16 + $0xc8] sm:$0xff] %v500_v52  ;;  %v505_v63 = vmax.f32 %v185_v60, 0.0  ;;  %v506_v0 = vmax.f32 %v186_v61, 0.0  ;;  %v188_v2 = vld [vmem:[%s1494_s3 + $0x108] sm:$0xff] }
  0x50   : > { %821 = vst [vmem:[%s1509_s16 + $0xd0] sm:$0xff] %v501_v53  ;;  %v507_v1 = vmax.f32 %v187_v62, 0.0  ;;  %v189_v3 = vld [vmem:[%s1494_s3 + $0x110] sm:$0xff]  ;;  %v190_v4 = vld [vmem:[%s1494_s3 + $0x118] sm:$0xff]  ;;  %822 = vst [vmem:[%s1509_s16 + $0xd8] sm:$0xff] %v502_v57  ;;  %v508_v5 = vmax.f32 %v188_v2, 0.0 }
  0x51   : > { %823 = vst [vmem:[%s1509_s16 + $0xe0] sm:$0xff] %v503_v58  ;;  %824 = vst [vmem:[%s1509_s16 + $0xe8] sm:$0xff] %v504_v59  ;;  %v509_v6 = vmax.f32 %v189_v3, 0.0  ;;  %v510_v7 = vmax.f32 %v190_v4, 0.0  ;;  %v191_v8 = vld [vmem:[%s1494_s3 + $0x120] sm:$0xff]  ;;  %v192_v9 = vld [vmem:[%s1494_s3 + $0x128] sm:$0xff] }
  0x52   : > { %v193_v10 = vld [vmem:[%s1494_s3 + $0x130] sm:$0xff]  ;;  %825 = vst [vmem:[%s1509_s16 + $0xf0] sm:$0xff] %v505_v63  ;;  %826 = vst [vmem:[%s1509_s16 + $0xf8] sm:$0xff] %v506_v0  ;;  %v511_v11 = vmax.f32 %v191_v8, 0.0  ;;  %v512_v12 = vmax.f32 %v192_v9, 0.0  ;;  %v194_v14 = vld [vmem:[%s1494_s3 + $0x138] sm:$0xff] }
  0x53   : > { %827 = vst [vmem:[%s1509_s16 + $0x100] sm:$0xff] %v507_v1  ;;  %v513_v13 = vmax.f32 %v193_v10, 0.0  ;;  %v195_v15 = vld [vmem:[%s1494_s3 + $0x140] sm:$0xff]  ;;  %v196_v16 = vld [vmem:[%s1494_s3 + $0x148] sm:$0xff]  ;;  %828 = vst [vmem:[%s1509_s16 + $0x108] sm:$0xff] %v508_v5  ;;  %v514_v17 = vmax.f32 %v194_v14, 0.0 }
  0x54   : > { %829 = vst [vmem:[%s1509_s16 + $0x110] sm:$0xff] %v509_v6  ;;  %830 = vst [vmem:[%s1509_s16 + $0x118] sm:$0xff] %v510_v7  ;;  %v515_v18 = vmax.f32 %v195_v15, 0.0  ;;  %v516_v19 = vmax.f32 %v196_v16, 0.0  ;;  %v197_v20 = vld [vmem:[%s1494_s3 + $0x150] sm:$0xff]  ;;  %v198_v21 = vld [vmem:[%s1494_s3 + $0x158] sm:$0xff] }
  0x55   : > { %v199_v22 = vld [vmem:[%s1494_s3 + $0x160] sm:$0xff]  ;;  %831 = vst [vmem:[%s1509_s16 + $0x120] sm:$0xff] %v511_v11  ;;  %832 = vst [vmem:[%s1509_s16 + $0x128] sm:$0xff] %v512_v12  ;;  %v517_v23 = vmax.f32 %v197_v20, 0.0  ;;  %v518_v24 = vmax.f32 %v198_v21, 0.0  ;;  %v200_v26 = vld [vmem:[%s1494_s3 + $0x168] sm:$0xff] }
  0x56   : > { %833 = vst [vmem:[%s1509_s16 + $0x130] sm:$0xff] %v513_v13  ;;  %v519_v25 = vmax.f32 %v199_v22, 0.0  ;;  %v201_v27 = vld [vmem:[%s1494_s3 + $0x170] sm:$0xff]  ;;  %v202_v28 = vld [vmem:[%s1494_s3 + $0x178] sm:$0xff]  ;;  %834 = vst [vmem:[%s1509_s16 + $0x138] sm:$0xff] %v514_v17  ;;  %v520_v29 = vmax.f32 %v200_v26, 0.0 }
  0x57   : > { %835 = vst [vmem:[%s1509_s16 + $0x140] sm:$0xff] %v515_v18  ;;  %836 = vst [vmem:[%s1509_s16 + $0x148] sm:$0xff] %v516_v19  ;;  %v521_v30 = vmax.f32 %v201_v27, 0.0  ;;  %v522_v31 = vmax.f32 %v202_v28, 0.0  ;;  %v203_v32 = vld [vmem:[%s1494_s3 + $0x180] sm:$0xff]  ;;  %v204_v33 = vld [vmem:[%s1494_s3 + $0x188] sm:$0xff] }
  0x58   : > { %v205_v34 = vld [vmem:[%s1494_s3 + $0x190] sm:$0xff]  ;;  %837 = vst [vmem:[%s1509_s16 + $0x150] sm:$0xff] %v517_v23  ;;  %838 = vst [vmem:[%s1509_s16 + $0x158] sm:$0xff] %v518_v24  ;;  %v523_v35 = vmax.f32 %v203_v32, 0.0  ;;  %v524_v36 = vmax.f32 %v204_v33, 0.0  ;;  %v206_v38 = vld [vmem:[%s1494_s3 + $0x198] sm:$0xff] }
  0x59   : > { %839 = vst [vmem:[%s1509_s16 + $0x160] sm:$0xff] %v519_v25  ;;  %v525_v37 = vmax.f32 %v205_v34, 0.0  ;;  %v207_v39 = vld [vmem:[%s1494_s3 + $0x1a0] sm:$0xff]  ;;  %v208_v40 = vld [vmem:[%s1494_s3 + $0x1a8] sm:$0xff]  ;;  %840 = vst [vmem:[%s1509_s16 + $0x168] sm:$0xff] %v520_v29  ;;  %v526_v41 = vmax.f32 %v206_v38, 0.0 }
  0x5a   : > { %841 = vst [vmem:[%s1509_s16 + $0x170] sm:$0xff] %v521_v30  ;;  %842 = vst [vmem:[%s1509_s16 + $0x178] sm:$0xff] %v522_v31  ;;  %v527_v42 = vmax.f32 %v207_v39, 0.0  ;;  %v528_v43 = vmax.f32 %v208_v40, 0.0  ;;  %v209_v44 = vld [vmem:[%s1494_s3 + $0x1b0] sm:$0xff]  ;;  %v210_v45 = vld [vmem:[%s1494_s3 + $0x1b8] sm:$0xff] }
  0x5b   : > { %v211_v46 = vld [vmem:[%s1494_s3 + $0x1c0] sm:$0xff]  ;;  %843 = vst [vmem:[%s1509_s16 + $0x180] sm:$0xff] %v523_v35  ;;  %844 = vst [vmem:[%s1509_s16 + $0x188] sm:$0xff] %v524_v36  ;;  %v529_v47 = vmax.f32 %v209_v44, 0.0  ;;  %v530_v48 = vmax.f32 %v210_v45, 0.0  ;;  %v212_v50 = vld [vmem:[%s1494_s3 + $0x1c8] sm:$0xff] }
  0x5c   : > { %845 = vst [vmem:[%s1509_s16 + $0x190] sm:$0xff] %v525_v37  ;;  %v531_v49 = vmax.f32 %v211_v46, 0.0  ;;  %v213_v51 = vld [vmem:[%s1494_s3 + $0x1d0] sm:$0xff]  ;;  %v214_v52 = vld [vmem:[%s1494_s3 + $0x1d8] sm:$0xff]  ;;  %846 = vst [vmem:[%s1509_s16 + $0x198] sm:$0xff] %v526_v41  ;;  %v532_v53 = vmax.f32 %v212_v50, 0.0 }
  0x5d   : > { %847 = vst [vmem:[%s1509_s16 + $0x1a0] sm:$0xff] %v527_v42  ;;  %848 = vst [vmem:[%s1509_s16 + $0x1a8] sm:$0xff] %v528_v43  ;;  %v533_v54 = vmax.f32 %v213_v51, 0.0  ;;  %v534_v55 = vmax.f32 %v214_v52, 0.0  ;;  %v215_v56 = vld [vmem:[%s1494_s3 + $0x1e0] sm:$0xff]  ;;  %v216_v57 = vld [vmem:[%s1494_s3 + $0x1e8] sm:$0xff] }
  0x5e   : > { %v217_v58 = vld [vmem:[%s1494_s3 + $0x1f0] sm:$0xff]  ;;  %849 = vst [vmem:[%s1509_s16 + $0x1b0] sm:$0xff] %v529_v47  ;;  %850 = vst [vmem:[%s1509_s16 + $0x1b8] sm:$0xff] %v530_v48  ;;  %v535_v59 = vmax.f32 %v215_v56, 0.0  ;;  %v536_v60 = vmax.f32 %v216_v57, 0.0  ;;  %v218_v62 = vld [vmem:[%s1494_s3 + $0x1f8] sm:$0xff] }
  0x5f   : > { %851 = vst [vmem:[%s1509_s16 + $0x1c0] sm:$0xff] %v531_v49  ;;  %v537_v61 = vmax.f32 %v217_v58, 0.0  ;;  %v219_v63 = vld [vmem:[%s1494_s3 + $0x200] sm:$0xff]  ;;  %v220_v0 = vld [vmem:[%s1494_s3 + $0x208] sm:$0xff]  ;;  %852 = vst [vmem:[%s1509_s16 + $0x1c8] sm:$0xff] %v532_v53  ;;  %v538_v1 = vmax.f32 %v218_v62, 0.0 }
  0x60   : > { %853 = vst [vmem:[%s1509_s16 + $0x1d0] sm:$0xff] %v533_v54  ;;  %854 = vst [vmem:[%s1509_s16 + $0x1d8] sm:$0xff] %v534_v55  ;;  %v539_v2 = vmax.f32 %v219_v63, 0.0  ;;  %v540_v3 = vmax.f32 %v220_v0, 0.0  ;;  %v221_v4 = vld [vmem:[%s1494_s3 + $0x210] sm:$0xff]  ;;  %v222_v5 = vld [vmem:[%s1494_s3 + $0x218] sm:$0xff] }
  0x61   : > { %v223_v6 = vld [vmem:[%s1494_s3 + $0x220] sm:$0xff]  ;;  %855 = vst [vmem:[%s1509_s16 + $0x1e0] sm:$0xff] %v535_v59  ;;  %856 = vst [vmem:[%s1509_s16 + $0x1e8] sm:$0xff] %v536_v60  ;;  %v541_v7 = vmax.f32 %v221_v4, 0.0  ;;  %v542_v8 = vmax.f32 %v222_v5, 0.0  ;;  %v224_v10 = vld [vmem:[%s1494_s3 + $0x228] sm:$0xff] }
  0x62   : > { %857 = vst [vmem:[%s1509_s16 + $0x1f0] sm:$0xff] %v537_v61  ;;  %v543_v9 = vmax.f32 %v223_v6, 0.0  ;;  %v225_v11 = vld [vmem:[%s1494_s3 + $0x230] sm:$0xff]  ;;  %v226_v12 = vld [vmem:[%s1494_s3 + $0x238] sm:$0xff]  ;;  %858 = vst [vmem:[%s1509_s16 + $0x1f8] sm:$0xff] %v538_v1  ;;  %v544_v13 = vmax.f32 %v224_v10, 0.0 }
  0x63   : > { %859 = vst [vmem:[%s1509_s16 + $0x200] sm:$0xff] %v539_v2  ;;  %860 = vst [vmem:[%s1509_s16 + $0x208] sm:$0xff] %v540_v3  ;;  %v545_v14 = vmax.f32 %v225_v11, 0.0  ;;  %v546_v15 = vmax.f32 %v226_v12, 0.0  ;;  %v227_v16 = vld [vmem:[%s1494_s3 + $0x240] sm:$0xff]  ;;  %v228_v17 = vld [vmem:[%s1494_s3 + $0x248] sm:$0xff] }
  0x64   : > { %v229_v18 = vld [vmem:[%s1494_s3 + $0x250] sm:$0xff]  ;;  %861 = vst [vmem:[%s1509_s16 + $0x210] sm:$0xff] %v541_v7  ;;  %862 = vst [vmem:[%s1509_s16 + $0x218] sm:$0xff] %v542_v8  ;;  %v547_v19 = vmax.f32 %v227_v16, 0.0  ;;  %v548_v20 = vmax.f32 %v228_v17, 0.0  ;;  %v230_v22 = vld [vmem:[%s1494_s3 + $0x258] sm:$0xff] }
  0x65   : > { %863 = vst [vmem:[%s1509_s16 + $0x220] sm:$0xff] %v543_v9  ;;  %v549_v21 = vmax.f32 %v229_v18, 0.0  ;;  %v231_v23 = vld [vmem:[%s1494_s3 + $0x260] sm:$0xff]  ;;  %v232_v24 = vld [vmem:[%s1494_s3 + $0x268] sm:$0xff]  ;;  %864 = vst [vmem:[%s1509_s16 + $0x228] sm:$0xff] %v544_v13  ;;  %v550_v25 = vmax.f32 %v230_v22, 0.0 }
  0x66   : > { %865 = vst [vmem:[%s1509_s16 + $0x230] sm:$0xff] %v545_v14  ;;  %866 = vst [vmem:[%s1509_s16 + $0x238] sm:$0xff] %v546_v15  ;;  %v551_v26 = vmax.f32 %v231_v23, 0.0  ;;  %v552_v27 = vmax.f32 %v232_v24, 0.0  ;;  %v233_v28 = vld [vmem:[%s1494_s3 + $0x270] sm:$0xff]  ;;  %v234_v29 = vld [vmem:[%s1494_s3 + $0x278] sm:$0xff] }
  0x67   : > { %v235_v30 = vld [vmem:[%s1494_s3 + $0x280] sm:$0xff]  ;;  %867 = vst [vmem:[%s1509_s16 + $0x240] sm:$0xff] %v547_v19  ;;  %868 = vst [vmem:[%s1509_s16 + $0x248] sm:$0xff] %v548_v20  ;;  %v553_v31 = vmax.f32 %v233_v28, 0.0  ;;  %v554_v32 = vmax.f32 %v234_v29, 0.0  ;;  %v236_v34 = vld [vmem:[%s1494_s3 + $0x288] sm:$0xff] }
  0x68   : > { %869 = vst [vmem:[%s1509_s16 + $0x250] sm:$0xff] %v549_v21  ;;  %v555_v33 = vmax.f32 %v235_v30, 0.0  ;;  %v237_v35 = vld [vmem:[%s1494_s3 + $0x290] sm:$0xff]  ;;  %v238_v36 = vld [vmem:[%s1494_s3 + $0x298] sm:$0xff]  ;;  %870 = vst [vmem:[%s1509_s16 + $0x258] sm:$0xff] %v550_v25  ;;  %v556_v37 = vmax.f32 %v236_v34, 0.0 }
  0x69   : > { %871 = vst [vmem:[%s1509_s16 + $0x260] sm:$0xff] %v551_v26  ;;  %872 = vst [vmem:[%s1509_s16 + $0x268] sm:$0xff] %v552_v27  ;;  %v557_v38 = vmax.f32 %v237_v35, 0.0  ;;  %v558_v39 = vmax.f32 %v238_v36, 0.0  ;;  %v239_v40 = vld [vmem:[%s1494_s3 + $0x2a0] sm:$0xff]  ;;  %v240_v41 = vld [vmem:[%s1494_s3 + $0x2a8] sm:$0xff] }
  0x6a   : > { %v241_v42 = vld [vmem:[%s1494_s3 + $0x2b0] sm:$0xff]  ;;  %873 = vst [vmem:[%s1509_s16 + $0x270] sm:$0xff] %v553_v31  ;;  %874 = vst [vmem:[%s1509_s16 + $0x278] sm:$0xff] %v554_v32  ;;  %v559_v43 = vmax.f32 %v239_v40, 0.0  ;;  %v560_v44 = vmax.f32 %v240_v41, 0.0  ;;  %v242_v46 = vld [vmem:[%s1494_s3 + $0x2b8] sm:$0xff] }
  0x6b   : > { %875 = vst [vmem:[%s1509_s16 + $0x280] sm:$0xff] %v555_v33  ;;  %v561_v45 = vmax.f32 %v241_v42, 0.0  ;;  %v243_v47 = vld [vmem:[%s1494_s3 + $0x2c0] sm:$0xff]  ;;  %v244_v48 = vld [vmem:[%s1494_s3 + $0x2c8] sm:$0xff]  ;;  %876 = vst [vmem:[%s1509_s16 + $0x288] sm:$0xff] %v556_v37  ;;  %v562_v49 = vmax.f32 %v242_v46, 0.0 }
  0x6c   : > { %877 = vst [vmem:[%s1509_s16 + $0x290] sm:$0xff] %v557_v38  ;;  %878 = vst [vmem:[%s1509_s16 + $0x298] sm:$0xff] %v558_v39  ;;  %v563_v50 = vmax.f32 %v243_v47, 0.0  ;;  %v564_v51 = vmax.f32 %v244_v48, 0.0  ;;  %v245_v52 = vld [vmem:[%s1494_s3 + $0x2d0] sm:$0xff]  ;;  %v246_v53 = vld [vmem:[%s1494_s3 + $0x2d8] sm:$0xff] }
  0x6d   : > { %v247_v54 = vld [vmem:[%s1494_s3 + $0x2e0] sm:$0xff]  ;;  %879 = vst [vmem:[%s1509_s16 + $0x2a0] sm:$0xff] %v559_v43  ;;  %880 = vst [vmem:[%s1509_s16 + $0x2a8] sm:$0xff] %v560_v44  ;;  %v565_v55 = vmax.f32 %v245_v52, 0.0  ;;  %v566_v56 = vmax.f32 %v246_v53, 0.0  ;;  %v248_v58 = vld [vmem:[%s1494_s3 + $0x2e8] sm:$0xff] }
  0x6e   : > { %881 = vst [vmem:[%s1509_s16 + $0x2b0] sm:$0xff] %v561_v45  ;;  %v567_v57 = vmax.f32 %v247_v54, 0.0  ;;  %v249_v59 = vld [vmem:[%s1494_s3 + $0x2f0] sm:$0xff]  ;;  %v250_v60 = vld [vmem:[%s1494_s3 + $0x2f8] sm:$0xff]  ;;  %882 = vst [vmem:[%s1509_s16 + $0x2b8] sm:$0xff] %v562_v49  ;;  %v568_v61 = vmax.f32 %v248_v58, 0.0 }
  0x6f   : > { %883 = vst [vmem:[%s1509_s16 + $0x2c0] sm:$0xff] %v563_v50  ;;  %884 = vst [vmem:[%s1509_s16 + $0x2c8] sm:$0xff] %v564_v51  ;;  %v569_v62 = vmax.f32 %v249_v59, 0.0  ;;  %v570_v63 = vmax.f32 %v250_v60, 0.0  ;;  %v251_v0 = vld [vmem:[%s1494_s3 + $0x300] sm:$0xff]  ;;  %v252_v1 = vld [vmem:[%s1494_s3 + $0x308] sm:$0xff] }
  0x70   : > { %v253_v2 = vld [vmem:[%s1494_s3 + $0x310] sm:$0xff]  ;;  %885 = vst [vmem:[%s1509_s16 + $0x2d0] sm:$0xff] %v565_v55  ;;  %886 = vst [vmem:[%s1509_s16 + $0x2d8] sm:$0xff] %v566_v56  ;;  %v571_v3 = vmax.f32 %v251_v0, 0.0  ;;  %v572_v4 = vmax.f32 %v252_v1, 0.0  ;;  %v254_v6 = vld [vmem:[%s1494_s3 + $0x318] sm:$0xff] }
  0x71   : > { %887 = vst [vmem:[%s1509_s16 + $0x2e0] sm:$0xff] %v567_v57  ;;  %v573_v5 = vmax.f32 %v253_v2, 0.0  ;;  %v255_v7 = vld [vmem:[%s1494_s3 + $0x320] sm:$0xff]  ;;  %v256_v8 = vld [vmem:[%s1494_s3 + $0x328] sm:$0xff]  ;;  %888 = vst [vmem:[%s1509_s16 + $0x2e8] sm:$0xff] %v568_v61  ;;  %v574_v9 = vmax.f32 %v254_v6, 0.0 }
  0x72   : > { %889 = vst [vmem:[%s1509_s16 + $0x2f0] sm:$0xff] %v569_v62  ;;  %890 = vst [vmem:[%s1509_s16 + $0x2f8] sm:$0xff] %v570_v63  ;;  %v575_v10 = vmax.f32 %v255_v7, 0.0  ;;  %v576_v11 = vmax.f32 %v256_v8, 0.0  ;;  %v257_v12 = vld [vmem:[%s1494_s3 + $0x330] sm:$0xff]  ;;  %v258_v13 = vld [vmem:[%s1494_s3 + $0x338] sm:$0xff] }
  0x73   : > { %v259_v14 = vld [vmem:[%s1494_s3 + $0x340] sm:$0xff]  ;;  %891 = vst [vmem:[%s1509_s16 + $0x300] sm:$0xff] %v571_v3  ;;  %892 = vst [vmem:[%s1509_s16 + $0x308] sm:$0xff] %v572_v4  ;;  %v577_v15 = vmax.f32 %v257_v12, 0.0  ;;  %v578_v16 = vmax.f32 %v258_v13, 0.0  ;;  %v260_v18 = vld [vmem:[%s1494_s3 + $0x348] sm:$0xff] }
  0x74   : > { %893 = vst [vmem:[%s1509_s16 + $0x310] sm:$0xff] %v573_v5  ;;  %v579_v17 = vmax.f32 %v259_v14, 0.0  ;;  %v261_v19 = vld [vmem:[%s1494_s3 + $0x350] sm:$0xff]  ;;  %v262_v20 = vld [vmem:[%s1494_s3 + $0x358] sm:$0xff]  ;;  %894 = vst [vmem:[%s1509_s16 + $0x318] sm:$0xff] %v574_v9  ;;  %v580_v21 = vmax.f32 %v260_v18, 0.0 }
  0x75   : > { %895 = vst [vmem:[%s1509_s16 + $0x320] sm:$0xff] %v575_v10  ;;  %896 = vst [vmem:[%s1509_s16 + $0x328] sm:$0xff] %v576_v11  ;;  %v581_v22 = vmax.f32 %v261_v19, 0.0  ;;  %v582_v23 = vmax.f32 %v262_v20, 0.0  ;;  %v263_v24 = vld [vmem:[%s1494_s3 + $0x360] sm:$0xff]  ;;  %v264_v25 = vld [vmem:[%s1494_s3 + $0x368] sm:$0xff] }
  0x76   : > { %v265_v26 = vld [vmem:[%s1494_s3 + $0x370] sm:$0xff]  ;;  %897 = vst [vmem:[%s1509_s16 + $0x330] sm:$0xff] %v577_v15  ;;  %898 = vst [vmem:[%s1509_s16 + $0x338] sm:$0xff] %v578_v16  ;;  %v583_v27 = vmax.f32 %v263_v24, 0.0  ;;  %v584_v28 = vmax.f32 %v264_v25, 0.0  ;;  %v266_v30 = vld [vmem:[%s1494_s3 + $0x378] sm:$0xff] }
  0x77   : > { %899 = vst [vmem:[%s1509_s16 + $0x340] sm:$0xff] %v579_v17  ;;  %v585_v29 = vmax.f32 %v265_v26, 0.0  ;;  %v267_v31 = vld [vmem:[%s1494_s3 + $0x380] sm:$0xff]  ;;  %v268_v32 = vld [vmem:[%s1494_s3 + $0x388] sm:$0xff]  ;;  %900 = vst [vmem:[%s1509_s16 + $0x348] sm:$0xff] %v580_v21  ;;  %v586_v33 = vmax.f32 %v266_v30, 0.0 }
  0x78   : > { %901 = vst [vmem:[%s1509_s16 + $0x350] sm:$0xff] %v581_v22  ;;  %902 = vst [vmem:[%s1509_s16 + $0x358] sm:$0xff] %v582_v23  ;;  %v587_v34 = vmax.f32 %v267_v31, 0.0  ;;  %v588_v35 = vmax.f32 %v268_v32, 0.0  ;;  %v269_v36 = vld [vmem:[%s1494_s3 + $0x390] sm:$0xff]  ;;  %v270_v37 = vld [vmem:[%s1494_s3 + $0x398] sm:$0xff] }
  0x79   : > { %v271_v38 = vld [vmem:[%s1494_s3 + $0x3a0] sm:$0xff]  ;;  %903 = vst [vmem:[%s1509_s16 + $0x360] sm:$0xff] %v583_v27  ;;  %904 = vst [vmem:[%s1509_s16 + $0x368] sm:$0xff] %v584_v28  ;;  %v589_v39 = vmax.f32 %v269_v36, 0.0  ;;  %v590_v40 = vmax.f32 %v270_v37, 0.0  ;;  %v272_v42 = vld [vmem:[%s1494_s3 + $0x3a8] sm:$0xff] }
  0x7a   : > { %905 = vst [vmem:[%s1509_s16 + $0x370] sm:$0xff] %v585_v29  ;;  %v591_v41 = vmax.f32 %v271_v38, 0.0  ;;  %v273_v43 = vld [vmem:[%s1494_s3 + $0x3b0] sm:$0xff]  ;;  %v274_v44 = vld [vmem:[%s1494_s3 + $0x3b8] sm:$0xff]  ;;  %906 = vst [vmem:[%s1509_s16 + $0x378] sm:$0xff] %v586_v33  ;;  %v592_v45 = vmax.f32 %v272_v42, 0.0 }
  0x7b   : > { %907 = vst [vmem:[%s1509_s16 + $0x380] sm:$0xff] %v587_v34  ;;  %908 = vst [vmem:[%s1509_s16 + $0x388] sm:$0xff] %v588_v35  ;;  %v593_v46 = vmax.f32 %v273_v43, 0.0  ;;  %v594_v47 = vmax.f32 %v274_v44, 0.0  ;;  %v275_v48 = vld [vmem:[%s1494_s3 + $0x3c0] sm:$0xff]  ;;  %v276_v49 = vld [vmem:[%s1494_s3 + $0x3c8] sm:$0xff] }
  0x7c   : > { %v277_v50 = vld [vmem:[%s1494_s3 + $0x3d0] sm:$0xff]  ;;  %909 = vst [vmem:[%s1509_s16 + $0x390] sm:$0xff] %v589_v39  ;;  %910 = vst [vmem:[%s1509_s16 + $0x398] sm:$0xff] %v590_v40  ;;  %v595_v51 = vmax.f32 %v275_v48, 0.0  ;;  %v596_v52 = vmax.f32 %v276_v49, 0.0  ;;  %v278_v54 = vld [vmem:[%s1494_s3 + $0x3d8] sm:$0xff] }
  0x7d   : > { %911 = vst [vmem:[%s1509_s16 + $0x3a0] sm:$0xff] %v591_v41  ;;  %v597_v53 = vmax.f32 %v277_v50, 0.0  ;;  %v279_v55 = vld [vmem:[%s1494_s3 + $0x3e0] sm:$0xff]  ;;  %v280_v56 = vld [vmem:[%s1494_s3 + $0x3e8] sm:$0xff]  ;;  %912 = vst [vmem:[%s1509_s16 + $0x3a8] sm:$0xff] %v592_v45  ;;  %v598_v57 = vmax.f32 %v278_v54, 0.0 }
  0x7e   : > { %913 = vst [vmem:[%s1509_s16 + $0x3b0] sm:$0xff] %v593_v46  ;;  %914 = vst [vmem:[%s1509_s16 + $0x3b8] sm:$0xff] %v594_v47  ;;  %v599_v58 = vmax.f32 %v279_v55, 0.0  ;;  %v600_v59 = vmax.f32 %v280_v56, 0.0  ;;  %v281_v60 = vld [vmem:[%s1494_s3 + $0x3f0] sm:$0xff]  ;;  %v282_v61 = vld [vmem:[%s1494_s3 + $0x3f8] sm:$0xff] }
  0x7f   : > { %v283_v62 = vld [vmem:[%s1494_s3 + $0x400] sm:$0xff]  ;;  %915 = vst [vmem:[%s1509_s16 + $0x3c0] sm:$0xff] %v595_v51  ;;  %916 = vst [vmem:[%s1509_s16 + $0x3c8] sm:$0xff] %v596_v52  ;;  %v601_v63 = vmax.f32 %v281_v60, 0.0  ;;  %v602_v0 = vmax.f32 %v282_v61, 0.0  ;;  %v284_v2 = vld [vmem:[%s1494_s3 + $0x408] sm:$0xff] }
  0x80   : > { %917 = vst [vmem:[%s1509_s16 + $0x3d0] sm:$0xff] %v597_v53  ;;  %v603_v1 = vmax.f32 %v283_v62, 0.0  ;;  %v285_v3 = vld [vmem:[%s1494_s3 + $0x410] sm:$0xff]  ;;  %v286_v4 = vld [vmem:[%s1494_s3 + $0x418] sm:$0xff]  ;;  %918 = vst [vmem:[%s1509_s16 + $0x3d8] sm:$0xff] %v598_v57  ;;  %v604_v5 = vmax.f32 %v284_v2, 0.0 }
  0x81   : > { %919 = vst [vmem:[%s1509_s16 + $0x3e0] sm:$0xff] %v599_v58  ;;  %920 = vst [vmem:[%s1509_s16 + $0x3e8] sm:$0xff] %v600_v59  ;;  %v605_v6 = vmax.f32 %v285_v3, 0.0  ;;  %v606_v7 = vmax.f32 %v286_v4, 0.0  ;;  %v287_v8 = vld [vmem:[%s1494_s3 + $0x420] sm:$0xff]  ;;  %v288_v9 = vld [vmem:[%s1494_s3 + $0x428] sm:$0xff] }
  0x82   : > { %v289_v10 = vld [vmem:[%s1494_s3 + $0x430] sm:$0xff]  ;;  %921 = vst [vmem:[%s1509_s16 + $0x3f0] sm:$0xff] %v601_v63  ;;  %922 = vst [vmem:[%s1509_s16 + $0x3f8] sm:$0xff] %v602_v0  ;;  %v607_v11 = vmax.f32 %v287_v8, 0.0  ;;  %v608_v12 = vmax.f32 %v288_v9, 0.0  ;;  %v290_v14 = vld [vmem:[%s1494_s3 + $0x438] sm:$0xff] }
  0x83   : > { %923 = vst [vmem:[%s1509_s16 + $0x400] sm:$0xff] %v603_v1  ;;  %v609_v13 = vmax.f32 %v289_v10, 0.0  ;;  %v291_v15 = vld [vmem:[%s1494_s3 + $0x440] sm:$0xff]  ;;  %v292_v16 = vld [vmem:[%s1494_s3 + $0x448] sm:$0xff]  ;;  %924 = vst [vmem:[%s1509_s16 + $0x408] sm:$0xff] %v604_v5  ;;  %v610_v17 = vmax.f32 %v290_v14, 0.0 }
  0x84   : > { %925 = vst [vmem:[%s1509_s16 + $0x410] sm:$0xff] %v605_v6  ;;  %926 = vst [vmem:[%s1509_s16 + $0x418] sm:$0xff] %v606_v7  ;;  %v611_v18 = vmax.f32 %v291_v15, 0.0  ;;  %v612_v19 = vmax.f32 %v292_v16, 0.0  ;;  %v293_v20 = vld [vmem:[%s1494_s3 + $0x450] sm:$0xff]  ;;  %v294_v21 = vld [vmem:[%s1494_s3 + $0x458] sm:$0xff] }
  0x85   : > { %v295_v22 = vld [vmem:[%s1494_s3 + $0x460] sm:$0xff]  ;;  %927 = vst [vmem:[%s1509_s16 + $0x420] sm:$0xff] %v607_v11  ;;  %928 = vst [vmem:[%s1509_s16 + $0x428] sm:$0xff] %v608_v12  ;;  %v613_v23 = vmax.f32 %v293_v20, 0.0  ;;  %v614_v24 = vmax.f32 %v294_v21, 0.0  ;;  %v296_v26 = vld [vmem:[%s1494_s3 + $0x468] sm:$0xff] }
  0x86   : > { %929 = vst [vmem:[%s1509_s16 + $0x430] sm:$0xff] %v609_v13  ;;  %v615_v25 = vmax.f32 %v295_v22, 0.0  ;;  %v297_v27 = vld [vmem:[%s1494_s3 + $0x470] sm:$0xff]  ;;  %v298_v28 = vld [vmem:[%s1494_s3 + $0x478] sm:$0xff]  ;;  %930 = vst [vmem:[%s1509_s16 + $0x438] sm:$0xff] %v610_v17  ;;  %v616_v29 = vmax.f32 %v296_v26, 0.0 }
  0x87   : > { %931 = vst [vmem:[%s1509_s16 + $0x440] sm:$0xff] %v611_v18  ;;  %932 = vst [vmem:[%s1509_s16 + $0x448] sm:$0xff] %v612_v19  ;;  %v617_v30 = vmax.f32 %v297_v27, 0.0  ;;  %v618_v31 = vmax.f32 %v298_v28, 0.0  ;;  %v299_v32 = vld [vmem:[%s1494_s3 + $0x480] sm:$0xff]  ;;  %v300_v33 = vld [vmem:[%s1494_s3 + $0x488] sm:$0xff] }
  0x88   : > { %v301_v34 = vld [vmem:[%s1494_s3 + $0x490] sm:$0xff]  ;;  %933 = vst [vmem:[%s1509_s16 + $0x450] sm:$0xff] %v613_v23  ;;  %934 = vst [vmem:[%s1509_s16 + $0x458] sm:$0xff] %v614_v24  ;;  %v619_v35 = vmax.f32 %v299_v32, 0.0  ;;  %v620_v36 = vmax.f32 %v300_v33, 0.0  ;;  %v302_v38 = vld [vmem:[%s1494_s3 + $0x498] sm:$0xff] }
  0x89   : > { %935 = vst [vmem:[%s1509_s16 + $0x460] sm:$0xff] %v615_v25  ;;  %v621_v37 = vmax.f32 %v301_v34, 0.0  ;;  %v303_v39 = vld [vmem:[%s1494_s3 + $0x4a0] sm:$0xff]  ;;  %v304_v40 = vld [vmem:[%s1494_s3 + $0x4a8] sm:$0xff]  ;;  %936 = vst [vmem:[%s1509_s16 + $0x468] sm:$0xff] %v616_v29  ;;  %v622_v41 = vmax.f32 %v302_v38, 0.0 }
  0x8a   : > { %937 = vst [vmem:[%s1509_s16 + $0x470] sm:$0xff] %v617_v30  ;;  %938 = vst [vmem:[%s1509_s16 + $0x478] sm:$0xff] %v618_v31  ;;  %v623_v42 = vmax.f32 %v303_v39, 0.0  ;;  %v624_v43 = vmax.f32 %v304_v40, 0.0  ;;  %v305_v44 = vld [vmem:[%s1494_s3 + $0x4b0] sm:$0xff]  ;;  %v306_v45 = vld [vmem:[%s1494_s3 + $0x4b8] sm:$0xff] }
  0x8b   : > { %v307_v46 = vld [vmem:[%s1494_s3 + $0x4c0] sm:$0xff]  ;;  %939 = vst [vmem:[%s1509_s16 + $0x480] sm:$0xff] %v619_v35  ;;  %940 = vst [vmem:[%s1509_s16 + $0x488] sm:$0xff] %v620_v36  ;;  %v625_v47 = vmax.f32 %v305_v44, 0.0  ;;  %v626_v48 = vmax.f32 %v306_v45, 0.0  ;;  %v308_v50 = vld [vmem:[%s1494_s3 + $0x4c8] sm:$0xff] }
  0x8c   : > { %941 = vst [vmem:[%s1509_s16 + $0x490] sm:$0xff] %v621_v37  ;;  %v627_v49 = vmax.f32 %v307_v46, 0.0  ;;  %v309_v51 = vld [vmem:[%s1494_s3 + $0x4d0] sm:$0xff]  ;;  %v310_v52 = vld [vmem:[%s1494_s3 + $0x4d8] sm:$0xff]  ;;  %942 = vst [vmem:[%s1509_s16 + $0x498] sm:$0xff] %v622_v41  ;;  %v628_v53 = vmax.f32 %v308_v50, 0.0 }
  0x8d   : > { %943 = vst [vmem:[%s1509_s16 + $0x4a0] sm:$0xff] %v623_v42  ;;  %944 = vst [vmem:[%s1509_s16 + $0x4a8] sm:$0xff] %v624_v43  ;;  %v629_v54 = vmax.f32 %v309_v51, 0.0  ;;  %v630_v55 = vmax.f32 %v310_v52, 0.0  ;;  %v311_v56 = vld [vmem:[%s1494_s3 + $0x4e0] sm:$0xff]  ;;  %v312_v57 = vld [vmem:[%s1494_s3 + $0x4e8] sm:$0xff] }
  0x8e   : > { %v313_v58 = vld [vmem:[%s1494_s3 + $0x4f0] sm:$0xff]  ;;  %945 = vst [vmem:[%s1509_s16 + $0x4b0] sm:$0xff] %v625_v47  ;;  %946 = vst [vmem:[%s1509_s16 + $0x4b8] sm:$0xff] %v626_v48  ;;  %v631_v59 = vmax.f32 %v311_v56, 0.0  ;;  %v632_v60 = vmax.f32 %v312_v57, 0.0  ;;  %v314_v62 = vld [vmem:[%s1494_s3 + $0x4f8] sm:$0xff] }
  0x8f   : > { %947 = vst [vmem:[%s1509_s16 + $0x4c0] sm:$0xff] %v627_v49  ;;  %v633_v61 = vmax.f32 %v313_v58, 0.0  ;;  %v315_v63 = vld [vmem:[%s1494_s3 + $0x500] sm:$0xff]  ;;  %v316_v0 = vld [vmem:[%s1494_s3 + $0x508] sm:$0xff]  ;;  %948 = vst [vmem:[%s1509_s16 + $0x4c8] sm:$0xff] %v628_v53  ;;  %v634_v1 = vmax.f32 %v314_v62, 0.0 }
  0x90   : > { %949 = vst [vmem:[%s1509_s16 + $0x4d0] sm:$0xff] %v629_v54  ;;  %950 = vst [vmem:[%s1509_s16 + $0x4d8] sm:$0xff] %v630_v55  ;;  %v635_v2 = vmax.f32 %v315_v63, 0.0  ;;  %v636_v3 = vmax.f32 %v316_v0, 0.0  ;;  %v317_v4 = vld [vmem:[%s1494_s3 + $0x510] sm:$0xff]  ;;  %v318_v5 = vld [vmem:[%s1494_s3 + $0x518] sm:$0xff] }
  0x91   : > { %v319_v6 = vld [vmem:[%s1494_s3 + $0x520] sm:$0xff]  ;;  %951 = vst [vmem:[%s1509_s16 + $0x4e0] sm:$0xff] %v631_v59  ;;  %952 = vst [vmem:[%s1509_s16 + $0x4e8] sm:$0xff] %v632_v60  ;;  %v637_v7 = vmax.f32 %v317_v4, 0.0  ;;  %v638_v8 = vmax.f32 %v318_v5, 0.0  ;;  %v320_v10 = vld [vmem:[%s1494_s3 + $0x528] sm:$0xff] }
  0x92   : > { %953 = vst [vmem:[%s1509_s16 + $0x4f0] sm:$0xff] %v633_v61  ;;  %v639_v9 = vmax.f32 %v319_v6, 0.0  ;;  %v321_v11 = vld [vmem:[%s1494_s3 + $0x530] sm:$0xff]  ;;  %v322_v12 = vld [vmem:[%s1494_s3 + $0x538] sm:$0xff]  ;;  %954 = vst [vmem:[%s1509_s16 + $0x4f8] sm:$0xff] %v634_v1  ;;  %v640_v13 = vmax.f32 %v320_v10, 0.0 }
  0x93   : > { %955 = vst [vmem:[%s1509_s16 + $0x500] sm:$0xff] %v635_v2  ;;  %956 = vst [vmem:[%s1509_s16 + $0x508] sm:$0xff] %v636_v3  ;;  %v641_v14 = vmax.f32 %v321_v11, 0.0  ;;  %v642_v15 = vmax.f32 %v322_v12, 0.0  ;;  %v323_v16 = vld [vmem:[%s1494_s3 + $0x540] sm:$0xff]  ;;  %v324_v17 = vld [vmem:[%s1494_s3 + $0x548] sm:$0xff] }
  0x94   : > { %v325_v18 = vld [vmem:[%s1494_s3 + $0x550] sm:$0xff]  ;;  %957 = vst [vmem:[%s1509_s16 + $0x510] sm:$0xff] %v637_v7  ;;  %958 = vst [vmem:[%s1509_s16 + $0x518] sm:$0xff] %v638_v8  ;;  %v643_v19 = vmax.f32 %v323_v16, 0.0  ;;  %v644_v20 = vmax.f32 %v324_v17, 0.0  ;;  %v326_v22 = vld [vmem:[%s1494_s3 + $0x558] sm:$0xff] }
  0x95   : > { %959 = vst [vmem:[%s1509_s16 + $0x520] sm:$0xff] %v639_v9  ;;  %v645_v21 = vmax.f32 %v325_v18, 0.0  ;;  %v327_v23 = vld [vmem:[%s1494_s3 + $0x560] sm:$0xff]  ;;  %v328_v24 = vld [vmem:[%s1494_s3 + $0x568] sm:$0xff]  ;;  %960 = vst [vmem:[%s1509_s16 + $0x528] sm:$0xff] %v640_v13  ;;  %v646_v25 = vmax.f32 %v326_v22, 0.0 }
  0x96   : > { %961 = vst [vmem:[%s1509_s16 + $0x530] sm:$0xff] %v641_v14  ;;  %962 = vst [vmem:[%s1509_s16 + $0x538] sm:$0xff] %v642_v15  ;;  %v647_v26 = vmax.f32 %v327_v23, 0.0  ;;  %v648_v27 = vmax.f32 %v328_v24, 0.0  ;;  %v329_v28 = vld [vmem:[%s1494_s3 + $0x570] sm:$0xff]  ;;  %v330_v29 = vld [vmem:[%s1494_s3 + $0x578] sm:$0xff] }
  0x97   : > { %v331_v30 = vld [vmem:[%s1494_s3 + $0x580] sm:$0xff]  ;;  %963 = vst [vmem:[%s1509_s16 + $0x540] sm:$0xff] %v643_v19  ;;  %964 = vst [vmem:[%s1509_s16 + $0x548] sm:$0xff] %v644_v20  ;;  %v649_v31 = vmax.f32 %v329_v28, 0.0  ;;  %v650_v32 = vmax.f32 %v330_v29, 0.0  ;;  %v332_v34 = vld [vmem:[%s1494_s3 + $0x588] sm:$0xff] }
  0x98   : > { %965 = vst [vmem:[%s1509_s16 + $0x550] sm:$0xff] %v645_v21  ;;  %v651_v33 = vmax.f32 %v331_v30, 0.0  ;;  %v333_v35 = vld [vmem:[%s1494_s3 + $0x590] sm:$0xff]  ;;  %v334_v36 = vld [vmem:[%s1494_s3 + $0x598] sm:$0xff]  ;;  %966 = vst [vmem:[%s1509_s16 + $0x558] sm:$0xff] %v646_v25  ;;  %v652_v37 = vmax.f32 %v332_v34, 0.0 }
  0x99   : > { %967 = vst [vmem:[%s1509_s16 + $0x560] sm:$0xff] %v647_v26  ;;  %968 = vst [vmem:[%s1509_s16 + $0x568] sm:$0xff] %v648_v27  ;;  %v653_v38 = vmax.f32 %v333_v35, 0.0  ;;  %v654_v39 = vmax.f32 %v334_v36, 0.0  ;;  %v335_v40 = vld [vmem:[%s1494_s3 + $0x5a0] sm:$0xff]  ;;  %v336_v41 = vld [vmem:[%s1494_s3 + $0x5a8] sm:$0xff] }
  0x9a   : > { %v337_v42 = vld [vmem:[%s1494_s3 + $0x5b0] sm:$0xff]  ;;  %969 = vst [vmem:[%s1509_s16 + $0x570] sm:$0xff] %v649_v31  ;;  %970 = vst [vmem:[%s1509_s16 + $0x578] sm:$0xff] %v650_v32  ;;  %v655_v43 = vmax.f32 %v335_v40, 0.0  ;;  %v656_v44 = vmax.f32 %v336_v41, 0.0  ;;  %v338_v46 = vld [vmem:[%s1494_s3 + $0x5b8] sm:$0xff] }
  0x9b   : > { %971 = vst [vmem:[%s1509_s16 + $0x580] sm:$0xff] %v651_v33  ;;  %v657_v45 = vmax.f32 %v337_v42, 0.0  ;;  %v339_v47 = vld [vmem:[%s1494_s3 + $0x5c0] sm:$0xff]  ;;  %v340_v48 = vld [vmem:[%s1494_s3 + $0x5c8] sm:$0xff]  ;;  %972 = vst [vmem:[%s1509_s16 + $0x588] sm:$0xff] %v652_v37  ;;  %v658_v49 = vmax.f32 %v338_v46, 0.0 }
  0x9c   : > { %973 = vst [vmem:[%s1509_s16 + $0x590] sm:$0xff] %v653_v38  ;;  %974 = vst [vmem:[%s1509_s16 + $0x598] sm:$0xff] %v654_v39  ;;  %v659_v50 = vmax.f32 %v339_v47, 0.0  ;;  %v660_v51 = vmax.f32 %v340_v48, 0.0  ;;  %v341_v52 = vld [vmem:[%s1494_s3 + $0x5d0] sm:$0xff]  ;;  %v342_v53 = vld [vmem:[%s1494_s3 + $0x5d8] sm:$0xff] }
  0x9d   : > { %v343_v54 = vld [vmem:[%s1494_s3 + $0x5e0] sm:$0xff]  ;;  %975 = vst [vmem:[%s1509_s16 + $0x5a0] sm:$0xff] %v655_v43  ;;  %976 = vst [vmem:[%s1509_s16 + $0x5a8] sm:$0xff] %v656_v44  ;;  %v661_v55 = vmax.f32 %v341_v52, 0.0  ;;  %v662_v56 = vmax.f32 %v342_v53, 0.0  ;;  %v344_v58 = vld [vmem:[%s1494_s3 + $0x5e8] sm:$0xff] }
  0x9e   : > { %977 = vst [vmem:[%s1509_s16 + $0x5b0] sm:$0xff] %v657_v45  ;;  %v663_v57 = vmax.f32 %v343_v54, 0.0  ;;  %v345_v59 = vld [vmem:[%s1494_s3 + $0x5f0] sm:$0xff]  ;;  %v346_v60 = vld [vmem:[%s1494_s3 + $0x5f8] sm:$0xff]  ;;  %978 = vst [vmem:[%s1509_s16 + $0x5b8] sm:$0xff] %v658_v49  ;;  %v664_v61 = vmax.f32 %v344_v58, 0.0 }
  0x9f   : > { %979 = vst [vmem:[%s1509_s16 + $0x5c0] sm:$0xff] %v659_v50  ;;  %980 = vst [vmem:[%s1509_s16 + $0x5c8] sm:$0xff] %v660_v51  ;;  %v665_v62 = vmax.f32 %v345_v59, 0.0  ;;  %v666_v63 = vmax.f32 %v346_v60, 0.0  ;;  %v347_v0 = vld [vmem:[%s1494_s3 + $0x600] sm:$0xff]  ;;  %v348_v1 = vld [vmem:[%s1494_s3 + $0x608] sm:$0xff] }
  0xa0   : > { %v349_v2 = vld [vmem:[%s1494_s3 + $0x610] sm:$0xff]  ;;  %981 = vst [vmem:[%s1509_s16 + $0x5d0] sm:$0xff] %v661_v55  ;;  %982 = vst [vmem:[%s1509_s16 + $0x5d8] sm:$0xff] %v662_v56  ;;  %v667_v3 = vmax.f32 %v347_v0, 0.0  ;;  %v668_v4 = vmax.f32 %v348_v1, 0.0  ;;  %v350_v6 = vld [vmem:[%s1494_s3 + $0x618] sm:$0xff] }
  0xa1   : > { %983 = vst [vmem:[%s1509_s16 + $0x5e0] sm:$0xff] %v663_v57  ;;  %v669_v5 = vmax.f32 %v349_v2, 0.0  ;;  %v351_v7 = vld [vmem:[%s1494_s3 + $0x620] sm:$0xff]  ;;  %v352_v8 = vld [vmem:[%s1494_s3 + $0x628] sm:$0xff]  ;;  %984 = vst [vmem:[%s1509_s16 + $0x5e8] sm:$0xff] %v664_v61  ;;  %v670_v9 = vmax.f32 %v350_v6, 0.0 }
  0xa2   : > { %985 = vst [vmem:[%s1509_s16 + $0x5f0] sm:$0xff] %v665_v62  ;;  %986 = vst [vmem:[%s1509_s16 + $0x5f8] sm:$0xff] %v666_v63  ;;  %v671_v10 = vmax.f32 %v351_v7, 0.0  ;;  %v672_v11 = vmax.f32 %v352_v8, 0.0  ;;  %v353_v12 = vld [vmem:[%s1494_s3 + $0x630] sm:$0xff]  ;;  %v354_v13 = vld [vmem:[%s1494_s3 + $0x638] sm:$0xff] }
  0xa3   : > { %v355_v14 = vld [vmem:[%s1494_s3 + $0x640] sm:$0xff]  ;;  %987 = vst [vmem:[%s1509_s16 + $0x600] sm:$0xff] %v667_v3  ;;  %988 = vst [vmem:[%s1509_s16 + $0x608] sm:$0xff] %v668_v4  ;;  %v673_v15 = vmax.f32 %v353_v12, 0.0  ;;  %v674_v16 = vmax.f32 %v354_v13, 0.0  ;;  %v356_v18 = vld [vmem:[%s1494_s3 + $0x648] sm:$0xff] }
  0xa4   : > { %989 = vst [vmem:[%s1509_s16 + $0x610] sm:$0xff] %v669_v5  ;;  %v675_v17 = vmax.f32 %v355_v14, 0.0  ;;  %v357_v19 = vld [vmem:[%s1494_s3 + $0x650] sm:$0xff]  ;;  %v358_v20 = vld [vmem:[%s1494_s3 + $0x658] sm:$0xff]  ;;  %990 = vst [vmem:[%s1509_s16 + $0x618] sm:$0xff] %v670_v9  ;;  %v676_v21 = vmax.f32 %v356_v18, 0.0 }
  0xa5   : > { %991 = vst [vmem:[%s1509_s16 + $0x620] sm:$0xff] %v671_v10  ;;  %992 = vst [vmem:[%s1509_s16 + $0x628] sm:$0xff] %v672_v11  ;;  %v677_v22 = vmax.f32 %v357_v19, 0.0  ;;  %v678_v23 = vmax.f32 %v358_v20, 0.0  ;;  %v359_v24 = vld [vmem:[%s1494_s3 + $0x660] sm:$0xff]  ;;  %v360_v25 = vld [vmem:[%s1494_s3 + $0x668] sm:$0xff] }
  0xa6   : > { %v361_v26 = vld [vmem:[%s1494_s3 + $0x670] sm:$0xff]  ;;  %993 = vst [vmem:[%s1509_s16 + $0x630] sm:$0xff] %v673_v15  ;;  %994 = vst [vmem:[%s1509_s16 + $0x638] sm:$0xff] %v674_v16  ;;  %v679_v27 = vmax.f32 %v359_v24, 0.0  ;;  %v680_v28 = vmax.f32 %v360_v25, 0.0  ;;  %v362_v30 = vld [vmem:[%s1494_s3 + $0x678] sm:$0xff] }
  0xa7   : > { %995 = vst [vmem:[%s1509_s16 + $0x640] sm:$0xff] %v675_v17  ;;  %v681_v29 = vmax.f32 %v361_v26, 0.0  ;;  %v363_v31 = vld [vmem:[%s1494_s3 + $0x680] sm:$0xff]  ;;  %v364_v32 = vld [vmem:[%s1494_s3 + $0x688] sm:$0xff]  ;;  %996 = vst [vmem:[%s1509_s16 + $0x648] sm:$0xff] %v676_v21  ;;  %v682_v33 = vmax.f32 %v362_v30, 0.0 }
  0xa8   : > { %997 = vst [vmem:[%s1509_s16 + $0x650] sm:$0xff] %v677_v22  ;;  %998 = vst [vmem:[%s1509_s16 + $0x658] sm:$0xff] %v678_v23  ;;  %v683_v34 = vmax.f32 %v363_v31, 0.0  ;;  %v684_v35 = vmax.f32 %v364_v32, 0.0  ;;  %v365_v36 = vld [vmem:[%s1494_s3 + $0x690] sm:$0xff]  ;;  %v366_v37 = vld [vmem:[%s1494_s3 + $0x698] sm:$0xff] }
  0xa9   : > { %v367_v38 = vld [vmem:[%s1494_s3 + $0x6a0] sm:$0xff]  ;;  %999 = vst [vmem:[%s1509_s16 + $0x660] sm:$0xff] %v679_v27  ;;  %1000 = vst [vmem:[%s1509_s16 + $0x668] sm:$0xff] %v680_v28  ;;  %v685_v39 = vmax.f32 %v365_v36, 0.0  ;;  %v686_v40 = vmax.f32 %v366_v37, 0.0  ;;  %v368_v42 = vld [vmem:[%s1494_s3 + $0x6a8] sm:$0xff] }
  0xaa   : > { %1001 = vst [vmem:[%s1509_s16 + $0x670] sm:$0xff] %v681_v29  ;;  %v687_v41 = vmax.f32 %v367_v38, 0.0  ;;  %v369_v43 = vld [vmem:[%s1494_s3 + $0x6b0] sm:$0xff]  ;;  %v370_v44 = vld [vmem:[%s1494_s3 + $0x6b8] sm:$0xff]  ;;  %1002 = vst [vmem:[%s1509_s16 + $0x678] sm:$0xff] %v682_v33  ;;  %v688_v45 = vmax.f32 %v368_v42, 0.0 }
  0xab   : > { %1003 = vst [vmem:[%s1509_s16 + $0x680] sm:$0xff] %v683_v34  ;;  %1004 = vst [vmem:[%s1509_s16 + $0x688] sm:$0xff] %v684_v35  ;;  %v689_v46 = vmax.f32 %v369_v43, 0.0  ;;  %v690_v47 = vmax.f32 %v370_v44, 0.0  ;;  %v371_v48 = vld [vmem:[%s1494_s3 + $0x6c0] sm:$0xff]  ;;  %v372_v49 = vld [vmem:[%s1494_s3 + $0x6c8] sm:$0xff] }
  0xac   : > { %v373_v50 = vld [vmem:[%s1494_s3 + $0x6d0] sm:$0xff]  ;;  %1005 = vst [vmem:[%s1509_s16 + $0x690] sm:$0xff] %v685_v39  ;;  %1006 = vst [vmem:[%s1509_s16 + $0x698] sm:$0xff] %v686_v40  ;;  %v691_v51 = vmax.f32 %v371_v48, 0.0  ;;  %v692_v52 = vmax.f32 %v372_v49, 0.0  ;;  %v374_v54 = vld [vmem:[%s1494_s3 + $0x6d8] sm:$0xff] }
  0xad   : > { %1007 = vst [vmem:[%s1509_s16 + $0x6a0] sm:$0xff] %v687_v41  ;;  %v693_v53 = vmax.f32 %v373_v50, 0.0  ;;  %v375_v55 = vld [vmem:[%s1494_s3 + $0x6e0] sm:$0xff]  ;;  %v376_v56 = vld [vmem:[%s1494_s3 + $0x6e8] sm:$0xff]  ;;  %1008 = vst [vmem:[%s1509_s16 + $0x6a8] sm:$0xff] %v688_v45  ;;  %v694_v57 = vmax.f32 %v374_v54, 0.0 }
  0xae   : > { %1009 = vst [vmem:[%s1509_s16 + $0x6b0] sm:$0xff] %v689_v46  ;;  %1010 = vst [vmem:[%s1509_s16 + $0x6b8] sm:$0xff] %v690_v47  ;;  %v695_v58 = vmax.f32 %v375_v55, 0.0  ;;  %v696_v59 = vmax.f32 %v376_v56, 0.0  ;;  %v377_v60 = vld [vmem:[%s1494_s3 + $0x6f0] sm:$0xff]  ;;  %v378_v61 = vld [vmem:[%s1494_s3 + $0x6f8] sm:$0xff] }
  0xaf   : > { %v379_v62 = vld [vmem:[%s1494_s3 + $0x700] sm:$0xff]  ;;  %1011 = vst [vmem:[%s1509_s16 + $0x6c0] sm:$0xff] %v691_v51  ;;  %1012 = vst [vmem:[%s1509_s16 + $0x6c8] sm:$0xff] %v692_v52  ;;  %v697_v63 = vmax.f32 %v377_v60, 0.0  ;;  %v698_v0 = vmax.f32 %v378_v61, 0.0  ;;  %v380_v2 = vld [vmem:[%s1494_s3 + $0x708] sm:$0xff] }
  0xb0   : > { %1013 = vst [vmem:[%s1509_s16 + $0x6d0] sm:$0xff] %v693_v53  ;;  %v699_v1 = vmax.f32 %v379_v62, 0.0  ;;  %v381_v3 = vld [vmem:[%s1494_s3 + $0x710] sm:$0xff]  ;;  %v382_v4 = vld [vmem:[%s1494_s3 + $0x718] sm:$0xff]  ;;  %1014 = vst [vmem:[%s1509_s16 + $0x6d8] sm:$0xff] %v694_v57  ;;  %v700_v5 = vmax.f32 %v380_v2, 0.0 }
  0xb1   : > { %1015 = vst [vmem:[%s1509_s16 + $0x6e0] sm:$0xff] %v695_v58  ;;  %1016 = vst [vmem:[%s1509_s16 + $0x6e8] sm:$0xff] %v696_v59  ;;  %v701_v6 = vmax.f32 %v381_v3, 0.0  ;;  %v702_v7 = vmax.f32 %v382_v4, 0.0  ;;  %v383_v8 = vld [vmem:[%s1494_s3 + $0x720] sm:$0xff]  ;;  %v384_v9 = vld [vmem:[%s1494_s3 + $0x728] sm:$0xff] }
  0xb2   : > { %v385_v10 = vld [vmem:[%s1494_s3 + $0x730] sm:$0xff]  ;;  %1017 = vst [vmem:[%s1509_s16 + $0x6f0] sm:$0xff] %v697_v63  ;;  %1018 = vst [vmem:[%s1509_s16 + $0x6f8] sm:$0xff] %v698_v0  ;;  %v703_v11 = vmax.f32 %v383_v8, 0.0  ;;  %v704_v12 = vmax.f32 %v384_v9, 0.0  ;;  %v386_v14 = vld [vmem:[%s1494_s3 + $0x738] sm:$0xff] }
  0xb3   : > { %1019 = vst [vmem:[%s1509_s16 + $0x700] sm:$0xff] %v699_v1  ;;  %v705_v13 = vmax.f32 %v385_v10, 0.0  ;;  %v387_v15 = vld [vmem:[%s1494_s3 + $0x740] sm:$0xff]  ;;  %v388_v16 = vld [vmem:[%s1494_s3 + $0x748] sm:$0xff]  ;;  %1020 = vst [vmem:[%s1509_s16 + $0x708] sm:$0xff] %v700_v5  ;;  %v706_v17 = vmax.f32 %v386_v14, 0.0 }
  0xb4   : > { %1021 = vst [vmem:[%s1509_s16 + $0x710] sm:$0xff] %v701_v6  ;;  %1022 = vst [vmem:[%s1509_s16 + $0x718] sm:$0xff] %v702_v7  ;;  %v707_v18 = vmax.f32 %v387_v15, 0.0  ;;  %v708_v19 = vmax.f32 %v388_v16, 0.0  ;;  %v389_v20 = vld [vmem:[%s1494_s3 + $0x750] sm:$0xff]  ;;  %v390_v21 = vld [vmem:[%s1494_s3 + $0x758] sm:$0xff] }
  0xb5   : > { %v391_v22 = vld [vmem:[%s1494_s3 + $0x760] sm:$0xff]  ;;  %1023 = vst [vmem:[%s1509_s16 + $0x720] sm:$0xff] %v703_v11  ;;  %1024 = vst [vmem:[%s1509_s16 + $0x728] sm:$0xff] %v704_v12  ;;  %v709_v23 = vmax.f32 %v389_v20, 0.0  ;;  %v710_v24 = vmax.f32 %v390_v21, 0.0  ;;  %v392_v26 = vld [vmem:[%s1494_s3 + $0x768] sm:$0xff] }
  0xb6   : > { %1025 = vst [vmem:[%s1509_s16 + $0x730] sm:$0xff] %v705_v13  ;;  %v711_v25 = vmax.f32 %v391_v22, 0.0  ;;  %v393_v27 = vld [vmem:[%s1494_s3 + $0x770] sm:$0xff]  ;;  %v394_v28 = vld [vmem:[%s1494_s3 + $0x778] sm:$0xff]  ;;  %1026 = vst [vmem:[%s1509_s16 + $0x738] sm:$0xff] %v706_v17  ;;  %v712_v29 = vmax.f32 %v392_v26, 0.0 }
  0xb7   : > { %1027 = vst [vmem:[%s1509_s16 + $0x740] sm:$0xff] %v707_v18  ;;  %1028 = vst [vmem:[%s1509_s16 + $0x748] sm:$0xff] %v708_v19  ;;  %v713_v30 = vmax.f32 %v393_v27, 0.0  ;;  %v714_v31 = vmax.f32 %v394_v28, 0.0  ;;  %v395_v32 = vld [vmem:[%s1494_s3 + $0x780] sm:$0xff]  ;;  %v396_v33 = vld [vmem:[%s1494_s3 + $0x788] sm:$0xff] }
  0xb8   : > { %v397_v34 = vld [vmem:[%s1494_s3 + $0x790] sm:$0xff]  ;;  %1029 = vst [vmem:[%s1509_s16 + $0x750] sm:$0xff] %v709_v23  ;;  %1030 = vst [vmem:[%s1509_s16 + $0x758] sm:$0xff] %v710_v24  ;;  %v715_v35 = vmax.f32 %v395_v32, 0.0  ;;  %v716_v36 = vmax.f32 %v396_v33, 0.0  ;;  %v398_v38 = vld [vmem:[%s1494_s3 + $0x798] sm:$0xff] }
  0xb9   : > { %1031 = vst [vmem:[%s1509_s16 + $0x760] sm:$0xff] %v711_v25  ;;  %v717_v37 = vmax.f32 %v397_v34, 0.0  ;;  %v399_v39 = vld [vmem:[%s1494_s3 + $0x7a0] sm:$0xff]  ;;  %v400_v40 = vld [vmem:[%s1494_s3 + $0x7a8] sm:$0xff]  ;;  %1032 = vst [vmem:[%s1509_s16 + $0x768] sm:$0xff] %v712_v29  ;;  %v718_v41 = vmax.f32 %v398_v38, 0.0 }
  0xba   : > { %1033 = vst [vmem:[%s1509_s16 + $0x770] sm:$0xff] %v713_v30  ;;  %1034 = vst [vmem:[%s1509_s16 + $0x778] sm:$0xff] %v714_v31  ;;  %v719_v42 = vmax.f32 %v399_v39, 0.0  ;;  %v720_v43 = vmax.f32 %v400_v40, 0.0  ;;  %v401_v44 = vld [vmem:[%s1494_s3 + $0x7b0] sm:$0xff]  ;;  %v402_v45 = vld [vmem:[%s1494_s3 + $0x7b8] sm:$0xff] }
  0xbb   : > { %v403_v46 = vld [vmem:[%s1494_s3 + $0x7c0] sm:$0xff]  ;;  %1035 = vst [vmem:[%s1509_s16 + $0x780] sm:$0xff] %v715_v35  ;;  %1036 = vst [vmem:[%s1509_s16 + $0x788] sm:$0xff] %v716_v36  ;;  %v721_v47 = vmax.f32 %v401_v44, 0.0  ;;  %v722_v48 = vmax.f32 %v402_v45, 0.0  ;;  %v404_v50 = vld [vmem:[%s1494_s3 + $0x7c8] sm:$0xff] }
  0xbc   : > { %1037 = vst [vmem:[%s1509_s16 + $0x790] sm:$0xff] %v717_v37  ;;  %v723_v49 = vmax.f32 %v403_v46, 0.0  ;;  %v405_v51 = vld [vmem:[%s1494_s3 + $0x7d0] sm:$0xff]  ;;  %v406_v52 = vld [vmem:[%s1494_s3 + $0x7d8] sm:$0xff]  ;;  %1038 = vst [vmem:[%s1509_s16 + $0x798] sm:$0xff] %v718_v41  ;;  %v724_v53 = vmax.f32 %v404_v50, 0.0 }
  0xbd   : > { %1039 = vst [vmem:[%s1509_s16 + $0x7a0] sm:$0xff] %v719_v42  ;;  %1040 = vst [vmem:[%s1509_s16 + $0x7a8] sm:$0xff] %v720_v43  ;;  %v725_v54 = vmax.f32 %v405_v51, 0.0  ;;  %v726_v55 = vmax.f32 %v406_v52, 0.0  ;;  %v407_v56 = vld [vmem:[%s1494_s3 + $0x7e0] sm:$0xff]  ;;  %v408_v57 = vld [vmem:[%s1494_s3 + $0x7e8] sm:$0xff] }
  0xbe   : > { %v409_v58 = vld [vmem:[%s1494_s3 + $0x7f0] sm:$0xff]  ;;  %1041 = vst [vmem:[%s1509_s16 + $0x7b0] sm:$0xff] %v721_v47  ;;  %1042 = vst [vmem:[%s1509_s16 + $0x7b8] sm:$0xff] %v722_v48  ;;  %v727_v59 = vmax.f32 %v407_v56, 0.0  ;;  %v728_v60 = vmax.f32 %v408_v57, 0.0  ;;  %v410_v62 = vld [vmem:[%s1494_s3 + $0x7f8] sm:$0xff] }
  0xbf   : > { %1043 = vst [vmem:[%s1509_s16 + $0x7c0] sm:$0xff] %v723_v49  ;;  %v729_v61 = vmax.f32 %v409_v58, 0.0  ;;  %v411_v63 = vld [vmem:[%s1494_s3 + $0x800] sm:$0xff]  ;;  %v412_v0 = vld [vmem:[%s1494_s3 + $0x808] sm:$0xff]  ;;  %1044 = vst [vmem:[%s1509_s16 + $0x7c8] sm:$0xff] %v724_v53  ;;  %v730_v1 = vmax.f32 %v410_v62, 0.0 }
  0xc0   : > { %1045 = vst [vmem:[%s1509_s16 + $0x7d0] sm:$0xff] %v725_v54  ;;  %1046 = vst [vmem:[%s1509_s16 + $0x7d8] sm:$0xff] %v726_v55  ;;  %v731_v2 = vmax.f32 %v411_v63, 0.0  ;;  %v732_v3 = vmax.f32 %v412_v0, 0.0  ;;  %v413_v4 = vld [vmem:[%s1494_s3 + $0x810] sm:$0xff]  ;;  %v414_v5 = vld [vmem:[%s1494_s3 + $0x818] sm:$0xff] }
  0xc1   : > { %v415_v6 = vld [vmem:[%s1494_s3 + $0x820] sm:$0xff]  ;;  %1047 = vst [vmem:[%s1509_s16 + $0x7e0] sm:$0xff] %v727_v59  ;;  %1048 = vst [vmem:[%s1509_s16 + $0x7e8] sm:$0xff] %v728_v60  ;;  %v733_v7 = vmax.f32 %v413_v4, 0.0  ;;  %v734_v8 = vmax.f32 %v414_v5, 0.0  ;;  %v416_v10 = vld [vmem:[%s1494_s3 + $0x828] sm:$0xff] }
  0xc2   : > { %1049 = vst [vmem:[%s1509_s16 + $0x7f0] sm:$0xff] %v729_v61  ;;  %v735_v9 = vmax.f32 %v415_v6, 0.0  ;;  %v417_v11 = vld [vmem:[%s1494_s3 + $0x830] sm:$0xff]  ;;  %v418_v12 = vld [vmem:[%s1494_s3 + $0x838] sm:$0xff]  ;;  %1050 = vst [vmem:[%s1509_s16 + $0x7f8] sm:$0xff] %v730_v1  ;;  %v736_v13 = vmax.f32 %v416_v10, 0.0 }
  0xc3   : > { %1051 = vst [vmem:[%s1509_s16 + $0x800] sm:$0xff] %v731_v2  ;;  %1052 = vst [vmem:[%s1509_s16 + $0x808] sm:$0xff] %v732_v3  ;;  %v737_v14 = vmax.f32 %v417_v11, 0.0  ;;  %v738_v15 = vmax.f32 %v418_v12, 0.0  ;;  %v419_v16 = vld [vmem:[%s1494_s3 + $0x840] sm:$0xff]  ;;  %v420_v17 = vld [vmem:[%s1494_s3 + $0x848] sm:$0xff] }
  0xc4   : > { %v421_v18 = vld [vmem:[%s1494_s3 + $0x850] sm:$0xff]  ;;  %1053 = vst [vmem:[%s1509_s16 + $0x810] sm:$0xff] %v733_v7  ;;  %1054 = vst [vmem:[%s1509_s16 + $0x818] sm:$0xff] %v734_v8  ;;  %v739_v19 = vmax.f32 %v419_v16, 0.0  ;;  %v740_v20 = vmax.f32 %v420_v17, 0.0  ;;  %v422_v22 = vld [vmem:[%s1494_s3 + $0x858] sm:$0xff] }
  0xc5   : > { %1055 = vst [vmem:[%s1509_s16 + $0x820] sm:$0xff] %v735_v9  ;;  %v741_v21 = vmax.f32 %v421_v18, 0.0  ;;  %v423_v23 = vld [vmem:[%s1494_s3 + $0x860] sm:$0xff]  ;;  %v424_v24 = vld [vmem:[%s1494_s3 + $0x868] sm:$0xff]  ;;  %1056 = vst [vmem:[%s1509_s16 + $0x828] sm:$0xff] %v736_v13  ;;  %v742_v25 = vmax.f32 %v422_v22, 0.0 }
  0xc6   : > { %1057 = vst [vmem:[%s1509_s16 + $0x830] sm:$0xff] %v737_v14  ;;  %1058 = vst [vmem:[%s1509_s16 + $0x838] sm:$0xff] %v738_v15  ;;  %v743_v26 = vmax.f32 %v423_v23, 0.0  ;;  %v744_v27 = vmax.f32 %v424_v24, 0.0  ;;  %v425_v28 = vld [vmem:[%s1494_s3 + $0x870] sm:$0xff]  ;;  %v426_v29 = vld [vmem:[%s1494_s3 + $0x878] sm:$0xff] }
  0xc7   : > { %v427_v30 = vld [vmem:[%s1494_s3 + $0x880] sm:$0xff]  ;;  %1059 = vst [vmem:[%s1509_s16 + $0x840] sm:$0xff] %v739_v19  ;;  %1060 = vst [vmem:[%s1509_s16 + $0x848] sm:$0xff] %v740_v20  ;;  %v745_v31 = vmax.f32 %v425_v28, 0.0  ;;  %v746_v32 = vmax.f32 %v426_v29, 0.0  ;;  %v428_v34 = vld [vmem:[%s1494_s3 + $0x888] sm:$0xff] }
  0xc8   : > { %1061 = vst [vmem:[%s1509_s16 + $0x850] sm:$0xff] %v741_v21  ;;  %v747_v33 = vmax.f32 %v427_v30, 0.0  ;;  %v429_v35 = vld [vmem:[%s1494_s3 + $0x890] sm:$0xff]  ;;  %v430_v36 = vld [vmem:[%s1494_s3 + $0x898] sm:$0xff]  ;;  %1062 = vst [vmem:[%s1509_s16 + $0x858] sm:$0xff] %v742_v25  ;;  %v748_v37 = vmax.f32 %v428_v34, 0.0 }
  0xc9   : > { %1063 = vst [vmem:[%s1509_s16 + $0x860] sm:$0xff] %v743_v26  ;;  %1064 = vst [vmem:[%s1509_s16 + $0x868] sm:$0xff] %v744_v27  ;;  %v749_v38 = vmax.f32 %v429_v35, 0.0  ;;  %v750_v39 = vmax.f32 %v430_v36, 0.0  ;;  %v431_v40 = vld [vmem:[%s1494_s3 + $0x8a0] sm:$0xff]  ;;  %v432_v41 = vld [vmem:[%s1494_s3 + $0x8a8] sm:$0xff] }
  0xca   : > { %v433_v42 = vld [vmem:[%s1494_s3 + $0x8b0] sm:$0xff]  ;;  %1065 = vst [vmem:[%s1509_s16 + $0x870] sm:$0xff] %v745_v31  ;;  %1066 = vst [vmem:[%s1509_s16 + $0x878] sm:$0xff] %v746_v32  ;;  %v751_v43 = vmax.f32 %v431_v40, 0.0  ;;  %v752_v44 = vmax.f32 %v432_v41, 0.0  ;;  %v434_v46 = vld [vmem:[%s1494_s3 + $0x8b8] sm:$0xff] }
  0xcb   : > { %1067 = vst [vmem:[%s1509_s16 + $0x880] sm:$0xff] %v747_v33  ;;  %v753_v45 = vmax.f32 %v433_v42, 0.0  ;;  %v435_v47 = vld [vmem:[%s1494_s3 + $0x8c0] sm:$0xff]  ;;  %v436_v48 = vld [vmem:[%s1494_s3 + $0x8c8] sm:$0xff]  ;;  %1068 = vst [vmem:[%s1509_s16 + $0x888] sm:$0xff] %v748_v37  ;;  %v754_v49 = vmax.f32 %v434_v46, 0.0 }
  0xcc   : > { %1069 = vst [vmem:[%s1509_s16 + $0x890] sm:$0xff] %v749_v38  ;;  %1070 = vst [vmem:[%s1509_s16 + $0x898] sm:$0xff] %v750_v39  ;;  %v755_v50 = vmax.f32 %v435_v47, 0.0  ;;  %v756_v51 = vmax.f32 %v436_v48, 0.0  ;;  %v437_v52 = vld [vmem:[%s1494_s3 + $0x8d0] sm:$0xff]  ;;  %v438_v53 = vld [vmem:[%s1494_s3 + $0x8d8] sm:$0xff] }
  0xcd   : > { %v439_v54 = vld [vmem:[%s1494_s3 + $0x8e0] sm:$0xff]  ;;  %1071 = vst [vmem:[%s1509_s16 + $0x8a0] sm:$0xff] %v751_v43  ;;  %1072 = vst [vmem:[%s1509_s16 + $0x8a8] sm:$0xff] %v752_v44  ;;  %v757_v55 = vmax.f32 %v437_v52, 0.0  ;;  %v758_v56 = vmax.f32 %v438_v53, 0.0  ;;  %v440_v58 = vld [vmem:[%s1494_s3 + $0x8e8] sm:$0xff] }
  0xce   : > { %1073 = vst [vmem:[%s1509_s16 + $0x8b0] sm:$0xff] %v753_v45  ;;  %v759_v57 = vmax.f32 %v439_v54, 0.0  ;;  %v441_v59 = vld [vmem:[%s1494_s3 + $0x8f0] sm:$0xff]  ;;  %v442_v60 = vld [vmem:[%s1494_s3 + $0x8f8] sm:$0xff]  ;;  %1074 = vst [vmem:[%s1509_s16 + $0x8b8] sm:$0xff] %v754_v49  ;;  %v760_v61 = vmax.f32 %v440_v58, 0.0 }
  0xcf   : > { %1075 = vst [vmem:[%s1509_s16 + $0x8c0] sm:$0xff] %v755_v50  ;;  %1076 = vst [vmem:[%s1509_s16 + $0x8c8] sm:$0xff] %v756_v51  ;;  %v761_v62 = vmax.f32 %v441_v59, 0.0  ;;  %v762_v63 = vmax.f32 %v442_v60, 0.0  ;;  %v443_v0 = vld [vmem:[%s1494_s3 + $0x900] sm:$0xff]  ;;  %v444_v1 = vld [vmem:[%s1494_s3 + $0x908] sm:$0xff] }
  0xd0   : > { %v445_v2 = vld [vmem:[%s1494_s3 + $0x910] sm:$0xff]  ;;  %1077 = vst [vmem:[%s1509_s16 + $0x8d0] sm:$0xff] %v757_v55  ;;  %1078 = vst [vmem:[%s1509_s16 + $0x8d8] sm:$0xff] %v758_v56  ;;  %v763_v3 = vmax.f32 %v443_v0, 0.0  ;;  %v764_v4 = vmax.f32 %v444_v1, 0.0  ;;  %v446_v6 = vld [vmem:[%s1494_s3 + $0x918] sm:$0xff] }
  0xd1   : > { %1079 = vst [vmem:[%s1509_s16 + $0x8e0] sm:$0xff] %v759_v57  ;;  %v765_v5 = vmax.f32 %v445_v2, 0.0  ;;  %v447_v7 = vld [vmem:[%s1494_s3 + $0x920] sm:$0xff]  ;;  %v448_v8 = vld [vmem:[%s1494_s3 + $0x928] sm:$0xff]  ;;  %1080 = vst [vmem:[%s1509_s16 + $0x8e8] sm:$0xff] %v760_v61  ;;  %v766_v9 = vmax.f32 %v446_v6, 0.0 }
  0xd2   : > { %1081 = vst [vmem:[%s1509_s16 + $0x8f0] sm:$0xff] %v761_v62  ;;  %1082 = vst [vmem:[%s1509_s16 + $0x8f8] sm:$0xff] %v762_v63  ;;  %v767_v10 = vmax.f32 %v447_v7, 0.0  ;;  %v768_v11 = vmax.f32 %v448_v8, 0.0  ;;  %v449_v12 = vld [vmem:[%s1494_s3 + $0x930] sm:$0xff]  ;;  %v450_v13 = vld [vmem:[%s1494_s3 + $0x938] sm:$0xff] }
  0xd3   : > { %v451_v14 = vld [vmem:[%s1494_s3 + $0x940] sm:$0xff]  ;;  %1083 = vst [vmem:[%s1509_s16 + $0x900] sm:$0xff] %v763_v3  ;;  %1084 = vst [vmem:[%s1509_s16 + $0x908] sm:$0xff] %v764_v4  ;;  %v769_v15 = vmax.f32 %v449_v12, 0.0  ;;  %v770_v16 = vmax.f32 %v450_v13, 0.0  ;;  %v452_v18 = vld [vmem:[%s1494_s3 + $0x948] sm:$0xff] }
  0xd4   : > { %1085 = vst [vmem:[%s1509_s16 + $0x910] sm:$0xff] %v765_v5  ;;  %v771_v17 = vmax.f32 %v451_v14, 0.0  ;;  %v453_v19 = vld [vmem:[%s1494_s3 + $0x950] sm:$0xff]  ;;  %v454_v20 = vld [vmem:[%s1494_s3 + $0x958] sm:$0xff]  ;;  %1086 = vst [vmem:[%s1509_s16 + $0x918] sm:$0xff] %v766_v9  ;;  %v772_v21 = vmax.f32 %v452_v18, 0.0 }
  0xd5   : > { %1087 = vst [vmem:[%s1509_s16 + $0x920] sm:$0xff] %v767_v10  ;;  %1088 = vst [vmem:[%s1509_s16 + $0x928] sm:$0xff] %v768_v11  ;;  %v773_v22 = vmax.f32 %v453_v19, 0.0  ;;  %v774_v23 = vmax.f32 %v454_v20, 0.0  ;;  %v455_v24 = vld [vmem:[%s1494_s3 + $0x960] sm:$0xff]  ;;  %v456_v25 = vld [vmem:[%s1494_s3 + $0x968] sm:$0xff] }
  0xd6   : > { %v457_v26 = vld [vmem:[%s1494_s3 + $0x970] sm:$0xff]  ;;  %1089 = vst [vmem:[%s1509_s16 + $0x930] sm:$0xff] %v769_v15  ;;  %1090 = vst [vmem:[%s1509_s16 + $0x938] sm:$0xff] %v770_v16  ;;  %v775_v27 = vmax.f32 %v455_v24, 0.0  ;;  %v776_v28 = vmax.f32 %v456_v25, 0.0  ;;  %v458_v30 = vld [vmem:[%s1494_s3 + $0x978] sm:$0xff] }
  0xd7   : > { %1091 = vst [vmem:[%s1509_s16 + $0x940] sm:$0xff] %v771_v17  ;;  %v777_v29 = vmax.f32 %v457_v26, 0.0  ;;  %v459_v31 = vld [vmem:[%s1494_s3 + $0x980] sm:$0xff]  ;;  %v460_v32 = vld [vmem:[%s1494_s3 + $0x988] sm:$0xff]  ;;  %1092 = vst [vmem:[%s1509_s16 + $0x948] sm:$0xff] %v772_v21  ;;  %v778_v33 = vmax.f32 %v458_v30, 0.0 }
  0xd8   : > { %1093 = vst [vmem:[%s1509_s16 + $0x950] sm:$0xff] %v773_v22  ;;  %1094 = vst [vmem:[%s1509_s16 + $0x958] sm:$0xff] %v774_v23  ;;  %v779_v34 = vmax.f32 %v459_v31, 0.0  ;;  %v780_v35 = vmax.f32 %v460_v32, 0.0  ;;  %v461_v36 = vld [vmem:[%s1494_s3 + $0x990] sm:$0xff]  ;;  %v462_v37 = vld [vmem:[%s1494_s3 + $0x998] sm:$0xff] }
  0xd9   : > { %v463_v38 = vld [vmem:[%s1494_s3 + $0x9a0] sm:$0xff]  ;;  %1095 = vst [vmem:[%s1509_s16 + $0x960] sm:$0xff] %v775_v27  ;;  %1096 = vst [vmem:[%s1509_s16 + $0x968] sm:$0xff] %v776_v28  ;;  %v781_v39 = vmax.f32 %v461_v36, 0.0  ;;  %v782_v40 = vmax.f32 %v462_v37, 0.0  ;;  %v464_v42 = vld [vmem:[%s1494_s3 + $0x9a8] sm:$0xff] }
  0xda   : > { %1097 = vst [vmem:[%s1509_s16 + $0x970] sm:$0xff] %v777_v29  ;;  %v783_v41 = vmax.f32 %v463_v38, 0.0  ;;  %v465_v43 = vld [vmem:[%s1494_s3 + $0x9b0] sm:$0xff]  ;;  %v466_v44 = vld [vmem:[%s1494_s3 + $0x9b8] sm:$0xff]  ;;  %1098 = vst [vmem:[%s1509_s16 + $0x978] sm:$0xff] %v778_v33  ;;  %v784_v45 = vmax.f32 %v464_v42, 0.0 }
  0xdb   : > { %1099 = vst [vmem:[%s1509_s16 + $0x980] sm:$0xff] %v779_v34  ;;  %1100 = vst [vmem:[%s1509_s16 + $0x988] sm:$0xff] %v780_v35  ;;  %v785_v46 = vmax.f32 %v465_v43, 0.0  ;;  %v786_v47 = vmax.f32 %v466_v44, 0.0  ;;  %v467_v48 = vld [vmem:[%s1494_s3 + $0x9c0] sm:$0xff]  ;;  %v468_v49 = vld [vmem:[%s1494_s3 + $0x9c8] sm:$0xff] }
  0xdc   : > { %v469_v50 = vld [vmem:[%s1494_s3 + $0x9d0] sm:$0xff]  ;;  %1101 = vst [vmem:[%s1509_s16 + $0x990] sm:$0xff] %v781_v39  ;;  %1102 = vst [vmem:[%s1509_s16 + $0x998] sm:$0xff] %v782_v40  ;;  %v787_v51 = vmax.f32 %v467_v48, 0.0  ;;  %v788_v52 = vmax.f32 %v468_v49, 0.0  ;;  %v470_v54 = vld [vmem:[%s1494_s3 + $0x9d8] sm:$0xff] }
  0xdd   : > { %1103 = vst [vmem:[%s1509_s16 + $0x9a0] sm:$0xff] %v783_v41  ;;  %v789_v53 = vmax.f32 %v469_v50, 0.0  ;;  %v471_v55 = vld [vmem:[%s1494_s3 + $0x9e0] sm:$0xff]  ;;  %v472_v56 = vld [vmem:[%s1494_s3 + $0x9e8] sm:$0xff]  ;;  %1104 = vst [vmem:[%s1509_s16 + $0x9a8] sm:$0xff] %v784_v45  ;;  %v790_v57 = vmax.f32 %v470_v54, 0.0 }
  0xde   : > { %1105 = vst [vmem:[%s1509_s16 + $0x9b0] sm:$0xff] %v785_v46  ;;  %1106 = vst [vmem:[%s1509_s16 + $0x9b8] sm:$0xff] %v786_v47  ;;  %v791_v58 = vmax.f32 %v471_v55, 0.0  ;;  %v792_v59 = vmax.f32 %v472_v56, 0.0  ;;  %v473_v60 = vld [vmem:[%s1494_s3 + $0x9f0] sm:$0xff]  ;;  %v474_v61 = vld [vmem:[%s1494_s3 + $0x9f8] sm:$0xff] }
  0xdf   : > { %1107 = vst [vmem:[%s1509_s16 + $0x9c0] sm:$0xff] %v787_v51  ;;  %1108 = vst [vmem:[%s1509_s16 + $0x9c8] sm:$0xff] %v788_v52  ;;  %v793_v62 = vmax.f32 %v473_v60, 0.0  ;;  %v794_v63 = vmax.f32 %v474_v61, 0.0  ;;  %1122 = sbr.rel (!%p1435_p9) target bundleno = 255 (0xff), region = 32  ;;  %s1124_s28 = ssub.s32 (%p1435_p9), 9, %s1123_s25 }
  0xe0   : > { %1109 = vst [vmem:[%s1509_s16 + $0x9d0] sm:$0xff] %v789_v53  ;;  %1110 = vst [vmem:[%s1509_s16 + $0x9d8] sm:$0xff] %v790_v57  ;;  %p1125_p6 = scmp.lt.s32.totalorder (%p1435_p9), %s1124_s28, 5 }
  0xe1   : > { %1111 = vst [vmem:[%s1509_s16 + $0x9e0] sm:$0xff] %v791_v58  ;;  %1112 = vst [vmem:[%s1509_s16 + $0x9e8] sm:$0xff] %v792_v59 }
  0xe2   : > { %1113 = vst [vmem:[%s1509_s16 + $0x9f0] sm:$0xff] %v793_v62  ;;  %1114 = vst [vmem:[%s1509_s16 + $0x9f8] sm:$0xff] %v794_v63 }
  0xe4   : > { %s2219_s28 = smov (!%p1125_p6, %s1124_s28), 5 }
  0xe5   : > { %s2146_s2 = sshll.u32 %s2219_s28, 13 }
  0xe6   : > { %s1130_s4 = ssub.s32 40960, %s2146_s2 }
  0xe7   : > { %1131 = vsyncadd %s1116_s23, %s1130_s4  ;;  %p1223_p10 = scmp.ne.s32.totalorder %s2146_s2, 0  ;;  %s1237_s17 = smul.u32 40960, %s1412_s10 }
  0xe8   : > { %s1137_s5 = sshll.u32 %s1509_s16, 4  ;;  %s1378_s20 = smov [#allocation5]   ;;  %s2159_s5 = int_to_ptr.vmem [resolvable:$true] %s1137_s5 }
  0xe9   : > { %s2157_s14 = scalar_lea.hbm %s2205_s1, %s1237_s17  ;;  %s1309_s19 = scalar_lea.vmem %s2159_s5, %s2146_s2 }
  0xea   : > { %p1310_p9 = scmp.ne.s32.totalorder %s2159_s5, %s1309_s19  ;;  %s1313_s21 = sshll.u32 %s1378_s20, 4  ;;  %s1314_s21 = int_to_ptr.vmem [resolvable:$false] %s1313_s21 }
  0xeb   : > { %s1315_s10 = scalar_lea.vmem %s1314_s21, 81920  ;;  %p1316_p7 = scmp.lt.s32.totalorder %s2159_s5, %s1314_s21 }
  0xec   : > { %p1311_p11 = pnand %p1310_p9, %p1223_p10  ;;  %p1317_p8 = scmp.lt.s32.totalorder %s1315_s10, %s1309_s19 }
  0xee   : > { %p1312_p13 = pneg %p1311_p11  ;;  %p1318_p12 = por %p1317_p8, %p1316_p7 }
  0xf0   : > { %p1319_p0 = pnand %p1318_p12, %p1312_p13 }
  0xf2   : > { %1322 = shalt.err (!%p1319_p0)
}
  0xf3   : > { %s1323_s22 = scalar_lea.hbm %s2157_s14, %s2146_s2  ;;  %s1327_s29 = scalar_lea.hbm %s2205_s1, 73728 }
  0xf4   : > { %p1324_p1 = scmp.ne.s32.totalorder %s2157_s14, %s1323_s22  ;;  %p1328_p4 = scmp.lt.s32.totalorder %s2157_s14, %s2205_s1 }
  0xf5   : > { %p1329_p5 = scmp.lt.s32.totalorder %s1327_s29, %s1323_s22 }
  0xf6   : > { %p1325_p3 = pnand %p1324_p1, %p1223_p10 }
  0xf7   : > { %p1330_p6 = por %p1329_p5, %p1328_p4 }
  0xf8   : > { %p1326_p2 = pneg %p1325_p3 }
  0xfa   : > { %p1331_p9 = pnand %p1330_p6, %p1326_p2 }
  0xfc   : > { %1334 = shalt.err (!%p1331_p9)
}
  0xfd   : > { %s1379_s16 = smov 8192   ;;  %s1380_s25 = smov 512  }
  0xfe   : > { %1143 = dma.vmem_to_hbm [thread:$0]  (%p1223_p10), %s2159_s5, %s2146_s2, %s2157_s14, %s1116_s23, %s1379_s16, %s1379_s16, %s1380_s25  }
  0xff PF: > { %s1152_s28 = sand.u32 1, %s1361_s6   ;;  %p2210_p11 = scmp.ne.s32.totalorder %s2209_s18, 0 }
 0x100   : > { %p2211_p13 = scmp.ge.s32.totalorder %s1373_s9, 2  ;;  %s1153_s4 = scalar_lea.sflag [#allocation4], %s1152_s28 }
 0x102   : > { %p1243_p7 = pnand %p2211_p13, %p2210_p11 }
 0x104   : > { %p1244_p8 = pneg %p1243_p7 }
 0x106   : > { %1356 = dma.done.wait (%p1244_p8), %s1153_s4, 40960  }
 0x107   : > { %1358 = vsyncadd (%p1244_p8), %s1153_s4, 4294926336  ;;  %p14_p12 = scmp.ge.s32.totalorder %s1416_s12, 4   ;;  %s2212_s6 = smov %s1365_s7 }
 0x108   : > { %s2213_s7 = smov %s1369_s8  ;;  %s2214_s8 = smov %s1428_s15 }
 0x109   : > { %s2215_s9 = smov %s1416_s12  ;;  %16 = sbr.rel (!%p14_p12) target bundleno = 5 (0x5), region = 69 }
 0x10e   :  { %1158 = vsyncpa [#allocation3], 1 }
 0x10f   :  { %1160 = vsyncpa [#allocation3 + $0x1], 1 }
 0x110   :  { %1161 = vsyncpa [#allocation4], 1 }
 0x111   :  { %1163 = vsyncpa [#allocation4 + $0x1], 1 }

</bundles_post_ra>
